<compile_context>
chip_gen: v7x
topology: tpu7x:2x2x1
jax: 0.10.0
libtpu: 0.0.40
codegen_flags: <defaults>
</compile_context>

<pallas_src>
import math

import jax
import jax.numpy as jnp
from jax.experimental import pallas as pl
from jax.experimental.pallas import tpu as pltpu

# ----------------------------- model config ---------------------------------
B = 2          # batch of sentences
S_SRC = 8      # source sequence length
S_TGT = 8      # target (decoder) sequence length
D = 32         # model dim
H = 4          # attention heads
DH = D // H    # head dim
F = 64         # FFN hidden dim
V = 128        # vocab size (lane-dense logits block)
EPS = 1e-5


# --------------------------- in-kernel helpers -------------------------------
def _heads_attention(q, k, v, *, causal):
    """q: (Sq, D), k/v: (Sk, D) -> (Sq, D). Per-head softmax attention in VMEM."""
    sq, sk = q.shape[0], k.shape[0]
    scale = 1.0 / math.sqrt(DH)
    if causal:
        row = jax.lax.broadcasted_iota(jnp.int32, (sq, sk), 0)
        col = jax.lax.broadcasted_iota(jnp.int32, (sq, sk), 1)
        neg = jnp.where(col > row, jnp.float32(-1e9), jnp.float32(0.0))
    heads = []
    for h in range(H):                     # static unroll, all data in vregs
        sl = slice(h * DH, (h + 1) * DH)
        qh, kh, vh = q[:, sl], k[:, sl], v[:, sl]
        # q @ k^T without materializing a transpose (transposed-RHS contraction)
        s = jax.lax.dot_general(qh, kh, (((1,), (1,)), ((), ())),
                                preferred_element_type=jnp.float32) * scale
        if causal:
            s = s + neg
        m = jnp.max(s, axis=-1, keepdims=True)
        p = jnp.exp(s - m)
        denom = jnp.sum(p, axis=-1, keepdims=True)
        attn = p * pl.reciprocal(denom, approx=True)      # EUP, not VPU divide
        heads.append(jnp.dot(attn, vh, preferred_element_type=jnp.float32))
    return jnp.concatenate(heads, axis=-1)


def _add_layernorm(x, res, gamma, beta):
    """Residual add + post-LayerNorm over the last dim (Marian post-LN)."""
    y = x + res
    mu = jnp.mean(y, axis=-1, keepdims=True)
    yc = y - mu
    var = jnp.mean(yc * yc, axis=-1, keepdims=True)
    return yc * jax.lax.rsqrt(var + EPS) * gamma + beta


def _ffn(x, w1, b1, w2, b2):
    h = jnp.dot(x, w1, preferred_element_type=jnp.float32) + b1
    h = jnp.maximum(h, 0.0)                # ReLU (Marian activation)
    return jnp.dot(h, w2, preferred_element_type=jnp.float32) + b2


# ------------------------------ fused kernel ---------------------------------
def _translator_step_kernel(
    src_ref, tgt_ref,
    # encoder layer
    e_wqkv, e_bqkv, e_wo, e_bo, e_ln, e_w1, e_b1, e_w2, e_b2,
    # decoder self-attention
    d_wqkv, d_bqkv, d_wo, d_bo,
    # decoder cross-attention
    d_cwq, d_cbq, d_cwkv, d_cbkv, d_cwo, d_cbo,
    # decoder FFN + LNs
    d_w1, d_b1, d_w2, d_b2, d_ln,
    # tied LM head
    emb, fbias,
    # output
    logits_ref,
):
    # ----- encoder layer (one batch element per grid step) -----
    x = src_ref[0]                                               # (S_SRC, D)
    qkv = jnp.dot(x, e_wqkv[...], preferred_element_type=jnp.float32) + e_bqkv[...]
    a = _heads_attention(qkv[:, :D], qkv[:, D:2 * D], qkv[:, 2 * D:], causal=False)
    a = jnp.dot(a, e_wo[...], preferred_element_type=jnp.float32) + e_bo[...]
    eln = e_ln[...]
    x = _add_layernorm(a, x, eln[0:1, :], eln[1:2, :])
    f = _ffn(x, e_w1[...], e_b1[...], e_w2[...], e_b2[...])
    enc = _add_layernorm(f, x, eln[2:3, :], eln[3:4, :])         # (S_SRC, D)

    # ----- decoder layer -----
    y = tgt_ref[0]                                               # (S_TGT, D)
    dln = d_ln[...]

    qkv = jnp.dot(y, d_wqkv[...], preferred_element_type=jnp.float32) + d_bqkv[...]
    a = _heads_attention(qkv[:, :D], qkv[:, D:2 * D], qkv[:, 2 * D:], causal=True)
    a = jnp.dot(a, d_wo[...], preferred_element_type=jnp.float32) + d_bo[...]
    y = _add_layernorm(a, y, dln[0:1, :], dln[1:2, :])

    q = jnp.dot(y, d_cwq[...], preferred_element_type=jnp.float32) + d_cbq[...]
    kv = jnp.dot(enc, d_cwkv[...], preferred_element_type=jnp.float32) + d_cbkv[...]
    a = _heads_attention(q, kv[:, :D], kv[:, D:], causal=False)
    a = jnp.dot(a, d_cwo[...], preferred_element_type=jnp.float32) + d_cbo[...]
    y = _add_layernorm(a, y, dln[2:3, :], dln[3:4, :])

    f = _ffn(y, d_w1[...], d_b1[...], d_w2[...], d_b2[...])
    y = _add_layernorm(f, y, dln[4:5, :], dln[5:6, :])           # (S_TGT, D)

    # ----- tied LM head: last position only (greedy next-token step) -----
    last = y[S_TGT - 1:S_TGT, :]                                 # (1, D)
    logits = jax.lax.dot_general(last, emb[...], (((1,), (1,)), ((), ())),
                                 preferred_element_type=jnp.float32) + fbias[...]
    logits_ref[...] = logits.reshape(1, 1, V)                    # lane-dense (1,1,128)


# ------------------------------ model glue -----------------------------------
def _sinusoidal_positions(seq_len, dim):
    pos = jnp.arange(seq_len, dtype=jnp.float32)[:, None]
    i = jnp.arange(dim // 2, dtype=jnp.float32)[None, :]
    angle = pos / jnp.power(10000.0, 2.0 * i / dim)
    return jnp.concatenate([jnp.sin(angle), jnp.cos(angle)], axis=-1)


def _embed(params, src_ids, tgt_ids):
    emb = params["embedding"]                      # (V, D), tied with the LM head
    scale = math.sqrt(D)
    src = jnp.take(emb, src_ids, axis=0) * scale + _sinusoidal_positions(S_SRC, D)[None]
    tgt = jnp.take(emb, tgt_ids, axis=0) * scale + _sinusoidal_positions(S_TGT, D)[None]
    return src, tgt


def _weight_tuple(params):
    enc_p, dec_p = params["enc"], params["dec"]
    return (
        enc_p["wqkv"], enc_p["bqkv"], enc_p["wo"], enc_p["bo"], enc_p["ln"],
        enc_p["ffn_w1"], enc_p["ffn_b1"], enc_p["ffn_w2"], enc_p["ffn_b2"],
        dec_p["wqkv"], dec_p["bqkv"], dec_p["wo"], dec_p["bo"],
        dec_p["cwq"], dec_p["cbq"], dec_p["cwkv"], dec_p["cbkv"],
        dec_p["cwo"], dec_p["cbo"],
        dec_p["ffn_w1"], dec_p["ffn_b1"], dec_p["ffn_w2"], dec_p["ffn_b2"],
        dec_p["ln"],
        params["embedding"], params["final_logits_bias"],
    )


def translator_forward(params, src_ids, tgt_ids):
    src, tgt = _embed(params, src_ids, tgt_ids)
    weights = _weight_tuple(params)

    # All weights are 2-D and VMEM-resident across the batch grid.
    const2d = lambda b: (0, 0)
    in_specs = [
        pl.BlockSpec((1, S_SRC, D), lambda b: (b, 0, 0)),
        pl.BlockSpec((1, S_TGT, D), lambda b: (b, 0, 0)),
    ] + [pl.BlockSpec(w.shape, const2d) for w in weights]

    logits = pl.pallas_call(
        _translator_step_kernel,
        out_shape=jax.ShapeDtypeStruct((B, 1, V), jnp.float32),
        grid=(B,),
        in_specs=in_specs,
        out_specs=pl.BlockSpec((1, 1, V), lambda b: (b, 0, 0)),
        compiler_params=pltpu.CompilerParams(
            dimension_semantics=("parallel",)),        # megacore-friendly on v7x
    )(src, tgt, *weights)

    logits = logits[:, 0, :]                           # (B, V), last target position
    next_token = jnp.argmax(logits, axis=-1)           # greedy decoding step
    return next_token, logits


# --------------------------- pure-JAX reference -------------------------------
def _ref_heads_attention(q, k, v, causal):
    scale = 1.0 / math.sqrt(DH)
    sq, sk = q.shape[0], k.shape[0]
    outs = []
    for h in range(H):
        sl = slice(h * DH, (h + 1) * DH)
        s = (q[:, sl] @ k[:, sl].T) * scale
        if causal:
            row = jnp.arange(sq)[:, None]
            col = jnp.arange(sk)[None, :]
            s = jnp.where(col > row, -1e9, s)
        p = jax.nn.softmax(s, axis=-1)
        outs.append(p @ v[:, sl])
    return jnp.concatenate(outs, axis=-1)


def _ref_add_layernorm(x, res, gamma, beta):
    y = x + res
    mu = jnp.mean(y, axis=-1, keepdims=True)
    yc = y - mu
    var = jnp.mean(yc * yc, axis=-1, keepdims=True)
    return yc * jax.lax.rsqrt(var + EPS) * gamma + beta


def _ref_ffn(x, w1, b1, w2, b2):
    h = jnp.maximum(x @ w1 + b1, 0.0)
    return h @ w2 + b2


def reference_forward(params, src_ids, tgt_ids):
    src, tgt = _embed(params, src_ids, tgt_ids)
    enc_p, dec_p = params["enc"], params["dec"]
    emb, fbias = params["embedding"], params["final_logits_bias"]

    def one_example(x, y):
        # encoder
        qkv = x @ enc_p["wqkv"] + enc_p["bqkv"]
        a = _ref_heads_attention(qkv[:, :D], qkv[:, D:2 * D], qkv[:, 2 * D:], False)
        a = a @ enc_p["wo"] + enc_p["bo"]
        eln = enc_p["ln"]
        x = _ref_add_layernorm(a, x, eln[0:1], eln[1:2])
        f = _ref_ffn(x, enc_p["ffn_w1"], enc_p["ffn_b1"], enc_p["ffn_w2"], enc_p["ffn_b2"])
        enc = _ref_add_layernorm(f, x, eln[2:3], eln[3:4])
        # decoder
        dln = dec_p["ln"]
        qkv = y @ dec_p["wqkv"] + dec_p["bqkv"]
        a = _ref_heads_attention(qkv[:, :D], qkv[:, D:2 * D], qkv[:, 2 * D:], True)
        a = a @ dec_p["wo"] + dec_p["bo"]
        y = _ref_add_layernorm(a, y, dln[0:1], dln[1:2])
        q = y @ dec_p["cwq"] + dec_p["cbq"]
        kv = enc @ dec_p["cwkv"] + dec_p["cbkv"]
        a = _ref_heads_attention(q, kv[:, :D], kv[:, D:], False)
        a = a @ dec_p["cwo"] + dec_p["cbo"]
        y = _ref_add_layernorm(a, y, dln[2:3], dln[3:4])
        f = _ref_ffn(y, dec_p["ffn_w1"], dec_p["ffn_b1"], dec_p["ffn_w2"], dec_p["ffn_b2"])
        y = _ref_add_layernorm(f, y, dln[4:5], dln[5:6])
        last = y[S_TGT - 1:S_TGT, :]
        return (last @ emb.T + fbias)[0]

    logits = jax.vmap(one_example)(src, tgt)           # (B, V)
    return jnp.argmax(logits, axis=-1), logits


# ------------------------------ parameter init --------------------------------
def init_params(key):
    def dense(k, din, dout):
        kw, kb = jax.random.split(k)
        w = jax.random.normal(kw, (din, dout), jnp.float32) * (1.0 / math.sqrt(din))
        b = jax.random.normal(kb, (1, dout), jnp.float32) * 0.01
        return w, b

    def fused_qkv(k):
        kq, kk, kv = jax.random.split(k, 3)
        wq, bq = dense(kq, D, D)
        wk, bk = dense(kk, D, D)
        wv, bv = dense(kv, D, D)
        return (jnp.concatenate([wq, wk, wv], axis=1),     # (D, 3D)
                jnp.concatenate([bq, bk, bv], axis=1))     # (1, 3D)

    def ln_pack(n_lns):
        rows = []
        for _ in range(n_lns):
            rows.append(jnp.ones((1, D), jnp.float32))     # gamma
            rows.append(jnp.zeros((1, D), jnp.float32))    # beta
        return jnp.concatenate(rows, axis=0)               # (2*n_lns, D)

    def enc_layer(k):
        ks = jax.random.split(k, 4)
        wqkv, bqkv = fused_qkv(ks[0])
        wo, bo = dense(ks[1], D, D)
        w1, b1 = dense(ks[2], D, F)
        w2, b2 = dense(ks[3], F, D)
        return dict(wqkv=wqkv, bqkv=bqkv, wo=wo, bo=bo, ln=ln_pack(2),
                    ffn_w1=w1, ffn_b1=b1, ffn_w2=w2, ffn_b2=b2)

    def dec_layer(k):
        ks = jax.random.split(k, 7)
        wqkv, bqkv = fused_qkv(ks[0])
        wo, bo = dense(ks[1], D, D)
        cwq, cbq = dense(ks[2], D, D)
        cwk, cbk = dense(ks[3], D, D)
        cwv, cbv = dense(ks[4], D, D)
        cwkv = jnp.concatenate([cwk, cwv], axis=1)          # (D, 2D)
        cbkv = jnp.concatenate([cbk, cbv], axis=1)          # (1, 2D)
        cwo, cbo = dense(ks[5], D, D)
        kf1, kf2 = jax.random.split(ks[6])
        w1, b1 = dense(kf1, D, F)
        w2, b2 = dense(kf2, F, D)
        return dict(wqkv=wqkv, bqkv=bqkv, wo=wo, bo=bo,
                    cwq=cwq, cbq=cbq, cwkv=cwkv, cbkv=cbkv, cwo=cwo, cbo=cbo,
                    ffn_w1=w1, ffn_b1=b1, ffn_w2=w2, ffn_b2=b2, ln=ln_pack(3))

    k_emb, k_enc, k_dec, k_bias = jax.random.split(key, 4)
    return {
        "embedding": jax.random.normal(k_emb, (V, D), jnp.float32) * 0.02,
        "enc": enc_layer(k_enc),
        "dec": dec_layer(k_dec),
        "final_logits_bias": jax.random.normal(k_bias, (1, V), jnp.float32) * 0.01,
    }


# ----------------------------------- main -------------------------------------
if __name__ == "__main__":
    key = jax.random.PRNGKey(0)
    k_src, k_tgt, k_par = jax.random.split(key, 3)

    src_ids = jax.random.randint(k_src, (B, S_SRC), 0, V, dtype=jnp.int32)
    tgt_ids = jax.random.randint(k_tgt, (B, S_TGT), 0, V, dtype=jnp.int32)
    params = init_params(k_par)

    next_token, logits = jax.jit(translator_forward)(params, src_ids, tgt_ids)
    jax.block_until_ready(next_token)
    jax.block_until_ready(logits)

    # pure-JAX reference check (approx reciprocal in-kernel -> loose tolerance)
    _, ref_logits = jax.jit(reference_forward)(params, src_ids, tgt_ids)
    jax.block_until_ready(ref_logits)

    assert next_token.shape == (B,)
    assert logits.shape == (B, V)
    assert bool(jnp.all(jnp.isfinite(logits)))
    assert bool(jnp.allclose(logits, ref_logits, atol=5e-2, rtol=2e-2)), (
        float(jnp.max(jnp.abs(logits - ref_logits))))
    print("KERNEL_OK")
</pallas_src>

<mosaic_0001>
module attributes {stable_mosaic.version = 11 : i64} {
  func.func @_translator_step_kernel(%arg0: i32, %arg1: memref<1x8x32xf32, #tpu.memory_space<vmem>>, %arg2: memref<1x8x32xf32, #tpu.memory_space<vmem>>, %arg3: memref<32x96xf32, #tpu.memory_space<vmem>>, %arg4: memref<1x96xf32, #tpu.memory_space<vmem>>, %arg5: memref<32x32xf32, #tpu.memory_space<vmem>>, %arg6: memref<1x32xf32, #tpu.memory_space<vmem>>, %arg7: memref<4x32xf32, #tpu.memory_space<vmem>>, %arg8: memref<32x64xf32, #tpu.memory_space<vmem>>, %arg9: memref<1x64xf32, #tpu.memory_space<vmem>>, %arg10: memref<64x32xf32, #tpu.memory_space<vmem>>, %arg11: memref<1x32xf32, #tpu.memory_space<vmem>>, %arg12: memref<32x96xf32, #tpu.memory_space<vmem>>, %arg13: memref<1x96xf32, #tpu.memory_space<vmem>>, %arg14: memref<32x32xf32, #tpu.memory_space<vmem>>, %arg15: memref<1x32xf32, #tpu.memory_space<vmem>>, %arg16: memref<32x32xf32, #tpu.memory_space<vmem>>, %arg17: memref<1x32xf32, #tpu.memory_space<vmem>>, %arg18: memref<32x64xf32, #tpu.memory_space<vmem>>, %arg19: memref<1x64xf32, #tpu.memory_space<vmem>>, %arg20: memref<32x32xf32, #tpu.memory_space<vmem>>, %arg21: memref<1x32xf32, #tpu.memory_space<vmem>>, %arg22: memref<32x64xf32, #tpu.memory_space<vmem>>, %arg23: memref<1x64xf32, #tpu.memory_space<vmem>>, %arg24: memref<64x32xf32, #tpu.memory_space<vmem>>, %arg25: memref<1x32xf32, #tpu.memory_space<vmem>>, %arg26: memref<6x32xf32, #tpu.memory_space<vmem>>, %arg27: memref<128x32xf32, #tpu.memory_space<vmem>>, %arg28: memref<1x128xf32, #tpu.memory_space<vmem>>, %arg29: memref<1x1x128xf32, #tpu.memory_space<vmem>>) attributes {dimension_semantics = [#tpu.dimension_semantics<parallel>], iteration_bounds = array<i64: 2>, scalar_prefetch = 0 : i64, scratch_operands = 0 : i64, tpu.core_type = #tpu.core_type<tc>, window_params = [{transform_indices = @transform_0, window_bounds = array<i64: 1, 8, 32>}, {transform_indices = @transform_1, window_bounds = array<i64: 1, 8, 32>}, {pipeline_mode = #tpu.pipeline_mode<synchronous>, transform_indices = @transform_2, window_bounds = array<i64: 32, 96>}, {pipeline_mode = #tpu.pipeline_mode<synchronous>, transform_indices = @transform_3, window_bounds = array<i64: 1, 96>}, {pipeline_mode = #tpu.pipeline_mode<synchronous>, transform_indices = @transform_4, window_bounds = array<i64: 32, 32>}, {pipeline_mode = #tpu.pipeline_mode<synchronous>, transform_indices = @transform_5, window_bounds = array<i64: 1, 32>}, {pipeline_mode = #tpu.pipeline_mode<synchronous>, transform_indices = @transform_6, window_bounds = array<i64: 4, 32>}, {pipeline_mode = #tpu.pipeline_mode<synchronous>, transform_indices = @transform_7, window_bounds = array<i64: 32, 64>}, {pipeline_mode = #tpu.pipeline_mode<synchronous>, transform_indices = @transform_8, window_bounds = array<i64: 1, 64>}, {pipeline_mode = #tpu.pipeline_mode<synchronous>, transform_indices = @transform_9, window_bounds = array<i64: 64, 32>}, {pipeline_mode = #tpu.pipeline_mode<synchronous>, transform_indices = @transform_10, window_bounds = array<i64: 1, 32>}, {pipeline_mode = #tpu.pipeline_mode<synchronous>, transform_indices = @transform_11, window_bounds = array<i64: 32, 96>}, {pipeline_mode = #tpu.pipeline_mode<synchronous>, transform_indices = @transform_12, window_bounds = array<i64: 1, 96>}, {pipeline_mode = #tpu.pipeline_mode<synchronous>, transform_indices = @transform_13, window_bounds = array<i64: 32, 32>}, {pipeline_mode = #tpu.pipeline_mode<synchronous>, transform_indices = @transform_14, window_bounds = array<i64: 1, 32>}, {pipeline_mode = #tpu.pipeline_mode<synchronous>, transform_indices = @transform_15, window_bounds = array<i64: 32, 32>}, {pipeline_mode = #tpu.pipeline_mode<synchronous>, transform_indices = @transform_16, window_bounds = array<i64: 1, 32>}, {pipeline_mode = #tpu.pipeline_mode<synchronous>, transform_indices = @transform_17, window_bounds = array<i64: 32, 64>}, {pipeline_mode = #tpu.pipeline_mode<synchronous>, transform_indices = @transform_18, window_bounds = array<i64: 1, 64>}, {pipeline_mode = #tpu.pipeline_mode<synchronous>, transform_indices = @transform_19, window_bounds = array<i64: 32, 32>}, {pipeline_mode = #tpu.pipeline_mode<synchronous>, transform_indices = @transform_20, window_bounds = array<i64: 1, 32>}, {pipeline_mode = #tpu.pipeline_mode<synchronous>, transform_indices = @transform_21, window_bounds = array<i64: 32, 64>}, {pipeline_mode = #tpu.pipeline_mode<synchronous>, transform_indices = @transform_22, window_bounds = array<i64: 1, 64>}, {pipeline_mode = #tpu.pipeline_mode<synchronous>, transform_indices = @transform_23, window_bounds = array<i64: 64, 32>}, {pipeline_mode = #tpu.pipeline_mode<synchronous>, transform_indices = @transform_24, window_bounds = array<i64: 1, 32>}, {pipeline_mode = #tpu.pipeline_mode<synchronous>, transform_indices = @transform_25, window_bounds = array<i64: 6, 32>}, {pipeline_mode = #tpu.pipeline_mode<synchronous>, transform_indices = @transform_26, window_bounds = array<i64: 128, 32>}, {pipeline_mode = #tpu.pipeline_mode<synchronous>, transform_indices = @transform_27, window_bounds = array<i64: 1, 128>}, {transform_indices = @transform_28, window_bounds = array<i64: 1, 1, 128>}]} {
    %c0 = arith.constant 0 : index
    %c0_0 = arith.constant 0 : index
    %c0_1 = arith.constant 0 : index
    %0 = vector.load %arg1[%c0, %c0_0, %c0_1] : memref<1x8x32xf32, #tpu.memory_space<vmem>>, vector<1x8x32xf32>
    %1 = vector.shape_cast %0 : vector<1x8x32xf32> to vector<8x32xf32>
    %c0_2 = arith.constant 0 : index
    %c0_3 = arith.constant 0 : index
    %2 = vector.load %arg3[%c0_2, %c0_3] : memref<32x96xf32, #tpu.memory_space<vmem>>, vector<32x96xf32>
    %cst = arith.constant dense<0.000000e+00> : vector<8x96xf32>
    %3 = tpu.matmul %1, %2, %cst {dimension_numbers = #tpu.dot_dimension_numbers<[1], [0], [0], [1], [0, 0, 1, 1], [], []>} : vector<8x32xf32>, vector<32x96xf32>, vector<8x96xf32> -> vector<8x96xf32>
    %c0_4 = arith.constant 0 : index
    %c0_5 = arith.constant 0 : index
    %4 = vector.load %arg4[%c0_4, %c0_5] : memref<1x96xf32, #tpu.memory_space<vmem>>, vector<1x96xf32>
    %5 = vector.broadcast %4 : vector<1x96xf32> to vector<8x96xf32>
    %6 = arith.addf %3, %5 : vector<8x96xf32>
    %7 = vector.extract_strided_slice %6 {offsets = [0, 0], sizes = [8, 32], strides = [1, 1]} : vector<8x96xf32> to vector<8x32xf32>
    %8 = vector.extract_strided_slice %6 {offsets = [0, 32], sizes = [8, 32], strides = [1, 1]} : vector<8x96xf32> to vector<8x32xf32>
    %9 = vector.extract_strided_slice %6 {offsets = [0, 64], sizes = [8, 32], strides = [1, 1]} : vector<8x96xf32> to vector<8x32xf32>
    %10 = vector.extract_strided_slice %7 {offsets = [0, 0], sizes = [8, 8], strides = [1, 1]} : vector<8x32xf32> to vector<8x8xf32>
    %11 = vector.extract_strided_slice %8 {offsets = [0, 0], sizes = [8, 8], strides = [1, 1]} : vector<8x32xf32> to vector<8x8xf32>
    %12 = vector.extract_strided_slice %9 {offsets = [0, 0], sizes = [8, 8], strides = [1, 1]} : vector<8x32xf32> to vector<8x8xf32>
    %cst_6 = arith.constant dense<0.000000e+00> : vector<8x8xf32>
    %13 = tpu.matmul %10, %11, %cst_6 {dimension_numbers = #tpu.dot_dimension_numbers<[1], [1], [0], [0], [0, 0, 1, 0], [], []>} : vector<8x8xf32>, vector<8x8xf32>, vector<8x8xf32> -> vector<8x8xf32>
    %cst_7 = arith.constant 0.353553385 : f32
    %14 = vector.broadcast %cst_7 : f32 to vector<8x8xf32>
    %15 = arith.mulf %13, %14 : vector<8x8xf32>
    %cst_8 = arith.constant dense<0xFF800000> : vector<8xf32>
    %16 = vector.multi_reduction <maximumf>, %15, %cst_8 [1] : vector<8x8xf32> to vector<8xf32>
    %17 = vector.shape_cast %16 : vector<8xf32> to vector<8x1xf32>
    %18 = vector.broadcast %17 : vector<8x1xf32> to vector<8x8xf32>
    %19 = arith.subf %15, %18 : vector<8x8xf32>
    %20 = math.exp %19 : vector<8x8xf32>
    %cst_9 = arith.constant dense<0.000000e+00> : vector<8xf32>
    %21 = vector.multi_reduction <add>, %20, %cst_9 [1] : vector<8x8xf32> to vector<8xf32>
    %22 = vector.shape_cast %21 : vector<8xf32> to vector<8x1xf32>
    %23 = tpu.reciprocal %22 {approx = true} : vector<8x1xf32> -> vector<8x1xf32>
    %24 = vector.broadcast %23 : vector<8x1xf32> to vector<8x8xf32>
    %25 = arith.mulf %20, %24 : vector<8x8xf32>
    %cst_10 = arith.constant dense<0.000000e+00> : vector<8x8xf32>
    %26 = tpu.matmul %25, %12, %cst_10 {dimension_numbers = #tpu.dot_dimension_numbers<[1], [0], [0], [1], [0, 0, 1, 1], [], []>} : vector<8x8xf32>, vector<8x8xf32>, vector<8x8xf32> -> vector<8x8xf32>
    %27 = vector.extract_strided_slice %7 {offsets = [0, 8], sizes = [8, 8], strides = [1, 1]} : vector<8x32xf32> to vector<8x8xf32>
    %28 = vector.extract_strided_slice %8 {offsets = [0, 8], sizes = [8, 8], strides = [1, 1]} : vector<8x32xf32> to vector<8x8xf32>
    %29 = vector.extract_strided_slice %9 {offsets = [0, 8], sizes = [8, 8], strides = [1, 1]} : vector<8x32xf32> to vector<8x8xf32>
    %cst_11 = arith.constant dense<0.000000e+00> : vector<8x8xf32>
    %30 = tpu.matmul %27, %28, %cst_11 {dimension_numbers = #tpu.dot_dimension_numbers<[1], [1], [0], [0], [0, 0, 1, 0], [], []>} : vector<8x8xf32>, vector<8x8xf32>, vector<8x8xf32> -> vector<8x8xf32>
    %cst_12 = arith.constant 0.353553385 : f32
    %31 = vector.broadcast %cst_12 : f32 to vector<8x8xf32>
    %32 = arith.mulf %30, %31 : vector<8x8xf32>
    %cst_13 = arith.constant dense<0xFF800000> : vector<8xf32>
    %33 = vector.multi_reduction <maximumf>, %32, %cst_13 [1] : vector<8x8xf32> to vector<8xf32>
    %34 = vector.shape_cast %33 : vector<8xf32> to vector<8x1xf32>
    %35 = vector.broadcast %34 : vector<8x1xf32> to vector<8x8xf32>
    %36 = arith.subf %32, %35 : vector<8x8xf32>
    %37 = math.exp %36 : vector<8x8xf32>
    %cst_14 = arith.constant dense<0.000000e+00> : vector<8xf32>
    %38 = vector.multi_reduction <add>, %37, %cst_14 [1] : vector<8x8xf32> to vector<8xf32>
    %39 = vector.shape_cast %38 : vector<8xf32> to vector<8x1xf32>
    %40 = tpu.reciprocal %39 {approx = true} : vector<8x1xf32> -> vector<8x1xf32>
    %41 = vector.broadcast %40 : vector<8x1xf32> to vector<8x8xf32>
    %42 = arith.mulf %37, %41 : vector<8x8xf32>
    %cst_15 = arith.constant dense<0.000000e+00> : vector<8x8xf32>
    %43 = tpu.matmul %42, %29, %cst_15 {dimension_numbers = #tpu.dot_dimension_numbers<[1], [0], [0], [1], [0, 0, 1, 1], [], []>} : vector<8x8xf32>, vector<8x8xf32>, vector<8x8xf32> -> vector<8x8xf32>
    %44 = vector.extract_strided_slice %7 {offsets = [0, 16], sizes = [8, 8], strides = [1, 1]} : vector<8x32xf32> to vector<8x8xf32>
    %45 = vector.extract_strided_slice %8 {offsets = [0, 16], sizes = [8, 8], strides = [1, 1]} : vector<8x32xf32> to vector<8x8xf32>
    %46 = vector.extract_strided_slice %9 {offsets = [0, 16], sizes = [8, 8], strides = [1, 1]} : vector<8x32xf32> to vector<8x8xf32>
    %cst_16 = arith.constant dense<0.000000e+00> : vector<8x8xf32>
    %47 = tpu.matmul %44, %45, %cst_16 {dimension_numbers = #tpu.dot_dimension_numbers<[1], [1], [0], [0], [0, 0, 1, 0], [], []>} : vector<8x8xf32>, vector<8x8xf32>, vector<8x8xf32> -> vector<8x8xf32>
    %cst_17 = arith.constant 0.353553385 : f32
    %48 = vector.broadcast %cst_17 : f32 to vector<8x8xf32>
    %49 = arith.mulf %47, %48 : vector<8x8xf32>
    %cst_18 = arith.constant dense<0xFF800000> : vector<8xf32>
    %50 = vector.multi_reduction <maximumf>, %49, %cst_18 [1] : vector<8x8xf32> to vector<8xf32>
    %51 = vector.shape_cast %50 : vector<8xf32> to vector<8x1xf32>
    %52 = vector.broadcast %51 : vector<8x1xf32> to vector<8x8xf32>
    %53 = arith.subf %49, %52 : vector<8x8xf32>
    %54 = math.exp %53 : vector<8x8xf32>
    %cst_19 = arith.constant dense<0.000000e+00> : vector<8xf32>
    %55 = vector.multi_reduction <add>, %54, %cst_19 [1] : vector<8x8xf32> to vector<8xf32>
    %56 = vector.shape_cast %55 : vector<8xf32> to vector<8x1xf32>
    %57 = tpu.reciprocal %56 {approx = true} : vector<8x1xf32> -> vector<8x1xf32>
    %58 = vector.broadcast %57 : vector<8x1xf32> to vector<8x8xf32>
    %59 = arith.mulf %54, %58 : vector<8x8xf32>
    %cst_20 = arith.constant dense<0.000000e+00> : vector<8x8xf32>
    %60 = tpu.matmul %59, %46, %cst_20 {dimension_numbers = #tpu.dot_dimension_numbers<[1], [0], [0], [1], [0, 0, 1, 1], [], []>} : vector<8x8xf32>, vector<8x8xf32>, vector<8x8xf32> -> vector<8x8xf32>
    %61 = vector.extract_strided_slice %7 {offsets = [0, 24], sizes = [8, 8], strides = [1, 1]} : vector<8x32xf32> to vector<8x8xf32>
    %62 = vector.extract_strided_slice %8 {offsets = [0, 24], sizes = [8, 8], strides = [1, 1]} : vector<8x32xf32> to vector<8x8xf32>
    %63 = vector.extract_strided_slice %9 {offsets = [0, 24], sizes = [8, 8], strides = [1, 1]} : vector<8x32xf32> to vector<8x8xf32>
    %cst_21 = arith.constant dense<0.000000e+00> : vector<8x8xf32>
    %64 = tpu.matmul %61, %62, %cst_21 {dimension_numbers = #tpu.dot_dimension_numbers<[1], [1], [0], [0], [0, 0, 1, 0], [], []>} : vector<8x8xf32>, vector<8x8xf32>, vector<8x8xf32> -> vector<8x8xf32>
    %cst_22 = arith.constant 0.353553385 : f32
    %65 = vector.broadcast %cst_22 : f32 to vector<8x8xf32>
    %66 = arith.mulf %64, %65 : vector<8x8xf32>
    %cst_23 = arith.constant dense<0xFF800000> : vector<8xf32>
    %67 = vector.multi_reduction <maximumf>, %66, %cst_23 [1] : vector<8x8xf32> to vector<8xf32>
    %68 = vector.shape_cast %67 : vector<8xf32> to vector<8x1xf32>
    %69 = vector.broadcast %68 : vector<8x1xf32> to vector<8x8xf32>
    %70 = arith.subf %66, %69 : vector<8x8xf32>
    %71 = math.exp %70 : vector<8x8xf32>
    %cst_24 = arith.constant dense<0.000000e+00> : vector<8xf32>
    %72 = vector.multi_reduction <add>, %71, %cst_24 [1] : vector<8x8xf32> to vector<8xf32>
    %73 = vector.shape_cast %72 : vector<8xf32> to vector<8x1xf32>
    %74 = tpu.reciprocal %73 {approx = true} : vector<8x1xf32> -> vector<8x1xf32>
    %75 = vector.broadcast %74 : vector<8x1xf32> to vector<8x8xf32>
    %76 = arith.mulf %71, %75 : vector<8x8xf32>
    %cst_25 = arith.constant dense<0.000000e+00> : vector<8x8xf32>
    %77 = tpu.matmul %76, %63, %cst_25 {dimension_numbers = #tpu.dot_dimension_numbers<[1], [0], [0], [1], [0, 0, 1, 1], [], []>} : vector<8x8xf32>, vector<8x8xf32>, vector<8x8xf32> -> vector<8x8xf32>
    %78 = tpu.concatenate %26, %43, %60, %77 in 1 : vector<8x8xf32>, vector<8x8xf32>, vector<8x8xf32>, vector<8x8xf32> -> vector<8x32xf32>
    %c0_26 = arith.constant 0 : index
    %c0_27 = arith.constant 0 : index
    %79 = vector.load %arg5[%c0_26, %c0_27] : memref<32x32xf32, #tpu.memory_space<vmem>>, vector<32x32xf32>
    %cst_28 = arith.constant dense<0.000000e+00> : vector<8x32xf32>
    %80 = tpu.matmul %78, %79, %cst_28 {dimension_numbers = #tpu.dot_dimension_numbers<[1], [0], [0], [1], [0, 0, 1, 1], [], []>} : vector<8x32xf32>, vector<32x32xf32>, vector<8x32xf32> -> vector<8x32xf32>
    %c0_29 = arith.constant 0 : index
    %c0_30 = arith.constant 0 : index
    %81 = vector.load %arg6[%c0_29, %c0_30] : memref<1x32xf32, #tpu.memory_space<vmem>>, vector<1x32xf32>
    %82 = vector.broadcast %81 : vector<1x32xf32> to vector<8x32xf32>
    %83 = arith.addf %80, %82 : vector<8x32xf32>
    %c0_31 = arith.constant 0 : index
    %c0_32 = arith.constant 0 : index
    %84 = vector.load %arg7[%c0_31, %c0_32] : memref<4x32xf32, #tpu.memory_space<vmem>>, vector<4x32xf32>
    %85 = vector.extract_strided_slice %84 {offsets = [0, 0], sizes = [1, 32], strides = [1, 1]} : vector<4x32xf32> to vector<1x32xf32>
    %86 = vector.extract_strided_slice %84 {offsets = [1, 0], sizes = [1, 32], strides = [1, 1]} : vector<4x32xf32> to vector<1x32xf32>
    %87 = arith.addf %83, %1 : vector<8x32xf32>
    %cst_33 = arith.constant dense<0.000000e+00> : vector<8xf32>
    %88 = vector.multi_reduction <add>, %87, %cst_33 [1] : vector<8x32xf32> to vector<8xf32>
    %89 = vector.shape_cast %88 : vector<8xf32> to vector<8x1xf32>
    %cst_34 = arith.constant 3.200000e+01 : f32
    %90 = vector.broadcast %cst_34 : f32 to vector<8x1xf32>
    %91 = arith.divf %89, %90 : vector<8x1xf32>
    %92 = vector.broadcast %91 : vector<8x1xf32> to vector<8x32xf32>
    %93 = arith.subf %87, %92 : vector<8x32xf32>
    %94 = arith.mulf %93, %93 : vector<8x32xf32>
    %cst_35 = arith.constant dense<0.000000e+00> : vector<8xf32>
    %95 = vector.multi_reduction <add>, %94, %cst_35 [1] : vector<8x32xf32> to vector<8xf32>
    %96 = vector.shape_cast %95 : vector<8xf32> to vector<8x1xf32>
    %cst_36 = arith.constant 3.200000e+01 : f32
    %97 = vector.broadcast %cst_36 : f32 to vector<8x1xf32>
    %98 = arith.divf %96, %97 : vector<8x1xf32>
    %cst_37 = arith.constant 9.99999974E-6 : f32
    %99 = vector.broadcast %cst_37 : f32 to vector<8x1xf32>
    %100 = arith.addf %98, %99 : vector<8x1xf32>
    %101 = math.rsqrt %100 : vector<8x1xf32>
    %102 = vector.broadcast %101 : vector<8x1xf32> to vector<8x32xf32>
    %103 = arith.mulf %93, %102 : vector<8x32xf32>
    %104 = vector.broadcast %85 : vector<1x32xf32> to vector<8x32xf32>
    %105 = arith.mulf %103, %104 : vector<8x32xf32>
    %106 = vector.broadcast %86 : vector<1x32xf32> to vector<8x32xf32>
    %107 = arith.addf %105, %106 : vector<8x32xf32>
    %c0_38 = arith.constant 0 : index
    %c0_39 = arith.constant 0 : index
    %108 = vector.load %arg8[%c0_38, %c0_39] : memref<32x64xf32, #tpu.memory_space<vmem>>, vector<32x64xf32>
    %c0_40 = arith.constant 0 : index
    %c0_41 = arith.constant 0 : index
    %109 = vector.load %arg9[%c0_40, %c0_41] : memref<1x64xf32, #tpu.memory_space<vmem>>, vector<1x64xf32>
    %c0_42 = arith.constant 0 : index
    %c0_43 = arith.constant 0 : index
    %110 = vector.load %arg10[%c0_42, %c0_43] : memref<64x32xf32, #tpu.memory_space<vmem>>, vector<64x32xf32>
    %c0_44 = arith.constant 0 : index
    %c0_45 = arith.constant 0 : index
    %111 = vector.load %arg11[%c0_44, %c0_45] : memref<1x32xf32, #tpu.memory_space<vmem>>, vector<1x32xf32>
    %cst_46 = arith.constant dense<0.000000e+00> : vector<8x64xf32>
    %112 = tpu.matmul %107, %108, %cst_46 {dimension_numbers = #tpu.dot_dimension_numbers<[1], [0], [0], [1], [0, 0, 1, 1], [], []>} : vector<8x32xf32>, vector<32x64xf32>, vector<8x64xf32> -> vector<8x64xf32>
    %113 = vector.broadcast %109 : vector<1x64xf32> to vector<8x64xf32>
    %114 = arith.addf %112, %113 : vector<8x64xf32>
    %cst_47 = arith.constant 0.000000e+00 : f32
    %115 = vector.broadcast %cst_47 : f32 to vector<8x64xf32>
    %116 = arith.maximumf %114, %115 : vector<8x64xf32>
    %cst_48 = arith.constant dense<0.000000e+00> : vector<8x32xf32>
    %117 = tpu.matmul %116, %110, %cst_48 {dimension_numbers = #tpu.dot_dimension_numbers<[1], [0], [0], [1], [0, 0, 1, 1], [], []>} : vector<8x64xf32>, vector<64x32xf32>, vector<8x32xf32> -> vector<8x32xf32>
    %118 = vector.broadcast %111 : vector<1x32xf32> to vector<8x32xf32>
    %119 = arith.addf %117, %118 : vector<8x32xf32>
    %120 = vector.extract_strided_slice %84 {offsets = [2, 0], sizes = [1, 32], strides = [1, 1]} : vector<4x32xf32> to vector<1x32xf32>
    %121 = vector.extract_strided_slice %84 {offsets = [3, 0], sizes = [1, 32], strides = [1, 1]} : vector<4x32xf32> to vector<1x32xf32>
    %122 = arith.addf %119, %107 : vector<8x32xf32>
    %cst_49 = arith.constant dense<0.000000e+00> : vector<8xf32>
    %123 = vector.multi_reduction <add>, %122, %cst_49 [1] : vector<8x32xf32> to vector<8xf32>
    %124 = vector.shape_cast %123 : vector<8xf32> to vector<8x1xf32>
    %cst_50 = arith.constant 3.200000e+01 : f32
    %125 = vector.broadcast %cst_50 : f32 to vector<8x1xf32>
    %126 = arith.divf %124, %125 : vector<8x1xf32>
    %127 = vector.broadcast %126 : vector<8x1xf32> to vector<8x32xf32>
    %128 = arith.subf %122, %127 : vector<8x32xf32>
    %129 = arith.mulf %128, %128 : vector<8x32xf32>
    %cst_51 = arith.constant dense<0.000000e+00> : vector<8xf32>
    %130 = vector.multi_reduction <add>, %129, %cst_51 [1] : vector<8x32xf32> to vector<8xf32>
    %131 = vector.shape_cast %130 : vector<8xf32> to vector<8x1xf32>
    %cst_52 = arith.constant 3.200000e+01 : f32
    %132 = vector.broadcast %cst_52 : f32 to vector<8x1xf32>
    %133 = arith.divf %131, %132 : vector<8x1xf32>
    %cst_53 = arith.constant 9.99999974E-6 : f32
    %134 = vector.broadcast %cst_53 : f32 to vector<8x1xf32>
    %135 = arith.addf %133, %134 : vector<8x1xf32>
    %136 = math.rsqrt %135 : vector<8x1xf32>
    %137 = vector.broadcast %136 : vector<8x1xf32> to vector<8x32xf32>
    %138 = arith.mulf %128, %137 : vector<8x32xf32>
    %139 = vector.broadcast %120 : vector<1x32xf32> to vector<8x32xf32>
    %140 = arith.mulf %138, %139 : vector<8x32xf32>
    %141 = vector.broadcast %121 : vector<1x32xf32> to vector<8x32xf32>
    %142 = arith.addf %140, %141 : vector<8x32xf32>
    %c0_54 = arith.constant 0 : index
    %c0_55 = arith.constant 0 : index
    %c0_56 = arith.constant 0 : index
    %143 = vector.load %arg2[%c0_54, %c0_55, %c0_56] : memref<1x8x32xf32, #tpu.memory_space<vmem>>, vector<1x8x32xf32>
    %144 = vector.shape_cast %143 : vector<1x8x32xf32> to vector<8x32xf32>
    %c0_57 = arith.constant 0 : index
    %c0_58 = arith.constant 0 : index
    %145 = vector.load %arg26[%c0_57, %c0_58] : memref<6x32xf32, #tpu.memory_space<vmem>>, vector<6x32xf32>
    %c0_59 = arith.constant 0 : index
    %c0_60 = arith.constant 0 : index
    %146 = vector.load %arg12[%c0_59, %c0_60] : memref<32x96xf32, #tpu.memory_space<vmem>>, vector<32x96xf32>
    %cst_61 = arith.constant dense<0.000000e+00> : vector<8x96xf32>
    %147 = tpu.matmul %144, %146, %cst_61 {dimension_numbers = #tpu.dot_dimension_numbers<[1], [0], [0], [1], [0, 0, 1, 1], [], []>} : vector<8x32xf32>, vector<32x96xf32>, vector<8x96xf32> -> vector<8x96xf32>
    %c0_62 = arith.constant 0 : index
    %c0_63 = arith.constant 0 : index
    %148 = vector.load %arg13[%c0_62, %c0_63] : memref<1x96xf32, #tpu.memory_space<vmem>>, vector<1x96xf32>
    %149 = vector.broadcast %148 : vector<1x96xf32> to vector<8x96xf32>
    %150 = arith.addf %147, %149 : vector<8x96xf32>
    %151 = vector.extract_strided_slice %150 {offsets = [0, 0], sizes = [8, 32], strides = [1, 1]} : vector<8x96xf32> to vector<8x32xf32>
    %152 = vector.extract_strided_slice %150 {offsets = [0, 32], sizes = [8, 32], strides = [1, 1]} : vector<8x96xf32> to vector<8x32xf32>
    %153 = vector.extract_strided_slice %150 {offsets = [0, 64], sizes = [8, 32], strides = [1, 1]} : vector<8x96xf32> to vector<8x32xf32>
    %154 = tpu.iota {dimensions = array<i32: 0>} : vector<8x8xi32>
    %155 = tpu.iota {dimensions = array<i32: 1>} : vector<8x8xi32>
    %156 = arith.cmpi sgt, %155, %154 : vector<8x8xi32>
    %cst_64 = arith.constant -1.000000e+09 : f32
    %cst_65 = arith.constant 0.000000e+00 : f32
    %157 = vector.broadcast %cst_64 : f32 to vector<8x8xf32>
    %158 = vector.broadcast %cst_65 : f32 to vector<8x8xf32>
    %159 = arith.select %156, %157, %158 : vector<8x8xi1>, vector<8x8xf32>
    %160 = vector.extract_strided_slice %151 {offsets = [0, 0], sizes = [8, 8], strides = [1, 1]} : vector<8x32xf32> to vector<8x8xf32>
    %161 = vector.extract_strided_slice %152 {offsets = [0, 0], sizes = [8, 8], strides = [1, 1]} : vector<8x32xf32> to vector<8x8xf32>
    %162 = vector.extract_strided_slice %153 {offsets = [0, 0], sizes = [8, 8], strides = [1, 1]} : vector<8x32xf32> to vector<8x8xf32>
    %cst_66 = arith.constant dense<0.000000e+00> : vector<8x8xf32>
    %163 = tpu.matmul %160, %161, %cst_66 {dimension_numbers = #tpu.dot_dimension_numbers<[1], [1], [0], [0], [0, 0, 1, 0], [], []>} : vector<8x8xf32>, vector<8x8xf32>, vector<8x8xf32> -> vector<8x8xf32>
    %cst_67 = arith.constant 0.353553385 : f32
    %164 = vector.broadcast %cst_67 : f32 to vector<8x8xf32>
    %165 = arith.mulf %163, %164 : vector<8x8xf32>
    %166 = arith.addf %165, %159 : vector<8x8xf32>
    %cst_68 = arith.constant dense<0xFF800000> : vector<8xf32>
    %167 = vector.multi_reduction <maximumf>, %166, %cst_68 [1] : vector<8x8xf32> to vector<8xf32>
    %168 = vector.shape_cast %167 : vector<8xf32> to vector<8x1xf32>
    %169 = vector.broadcast %168 : vector<8x1xf32> to vector<8x8xf32>
    %170 = arith.subf %166, %169 : vector<8x8xf32>
    %171 = math.exp %170 : vector<8x8xf32>
    %cst_69 = arith.constant dense<0.000000e+00> : vector<8xf32>
    %172 = vector.multi_reduction <add>, %171, %cst_69 [1] : vector<8x8xf32> to vector<8xf32>
    %173 = vector.shape_cast %172 : vector<8xf32> to vector<8x1xf32>
    %174 = tpu.reciprocal %173 {approx = true} : vector<8x1xf32> -> vector<8x1xf32>
    %175 = vector.broadcast %174 : vector<8x1xf32> to vector<8x8xf32>
    %176 = arith.mulf %171, %175 : vector<8x8xf32>
    %cst_70 = arith.constant dense<0.000000e+00> : vector<8x8xf32>
    %177 = tpu.matmul %176, %162, %cst_70 {dimension_numbers = #tpu.dot_dimension_numbers<[1], [0], [0], [1], [0, 0, 1, 1], [], []>} : vector<8x8xf32>, vector<8x8xf32>, vector<8x8xf32> -> vector<8x8xf32>
    %178 = vector.extract_strided_slice %151 {offsets = [0, 8], sizes = [8, 8], strides = [1, 1]} : vector<8x32xf32> to vector<8x8xf32>
    %179 = vector.extract_strided_slice %152 {offsets = [0, 8], sizes = [8, 8], strides = [1, 1]} : vector<8x32xf32> to vector<8x8xf32>
    %180 = vector.extract_strided_slice %153 {offsets = [0, 8], sizes = [8, 8], strides = [1, 1]} : vector<8x32xf32> to vector<8x8xf32>
    %cst_71 = arith.constant dense<0.000000e+00> : vector<8x8xf32>
    %181 = tpu.matmul %178, %179, %cst_71 {dimension_numbers = #tpu.dot_dimension_numbers<[1], [1], [0], [0], [0, 0, 1, 0], [], []>} : vector<8x8xf32>, vector<8x8xf32>, vector<8x8xf32> -> vector<8x8xf32>
    %cst_72 = arith.constant 0.353553385 : f32
    %182 = vector.broadcast %cst_72 : f32 to vector<8x8xf32>
    %183 = arith.mulf %181, %182 : vector<8x8xf32>
    %184 = arith.addf %183, %159 : vector<8x8xf32>
    %cst_73 = arith.constant dense<0xFF800000> : vector<8xf32>
    %185 = vector.multi_reduction <maximumf>, %184, %cst_73 [1] : vector<8x8xf32> to vector<8xf32>
    %186 = vector.shape_cast %185 : vector<8xf32> to vector<8x1xf32>
    %187 = vector.broadcast %186 : vector<8x1xf32> to vector<8x8xf32>
    %188 = arith.subf %184, %187 : vector<8x8xf32>
    %189 = math.exp %188 : vector<8x8xf32>
    %cst_74 = arith.constant dense<0.000000e+00> : vector<8xf32>
    %190 = vector.multi_reduction <add>, %189, %cst_74 [1] : vector<8x8xf32> to vector<8xf32>
    %191 = vector.shape_cast %190 : vector<8xf32> to vector<8x1xf32>
    %192 = tpu.reciprocal %191 {approx = true} : vector<8x1xf32> -> vector<8x1xf32>
    %193 = vector.broadcast %192 : vector<8x1xf32> to vector<8x8xf32>
    %194 = arith.mulf %189, %193 : vector<8x8xf32>
    %cst_75 = arith.constant dense<0.000000e+00> : vector<8x8xf32>
    %195 = tpu.matmul %194, %180, %cst_75 {dimension_numbers = #tpu.dot_dimension_numbers<[1], [0], [0], [1], [0, 0, 1, 1], [], []>} : vector<8x8xf32>, vector<8x8xf32>, vector<8x8xf32> -> vector<8x8xf32>
    %196 = vector.extract_strided_slice %151 {offsets = [0, 16], sizes = [8, 8], strides = [1, 1]} : vector<8x32xf32> to vector<8x8xf32>
    %197 = vector.extract_strided_slice %152 {offsets = [0, 16], sizes = [8, 8], strides = [1, 1]} : vector<8x32xf32> to vector<8x8xf32>
    %198 = vector.extract_strided_slice %153 {offsets = [0, 16], sizes = [8, 8], strides = [1, 1]} : vector<8x32xf32> to vector<8x8xf32>
    %cst_76 = arith.constant dense<0.000000e+00> : vector<8x8xf32>
    %199 = tpu.matmul %196, %197, %cst_76 {dimension_numbers = #tpu.dot_dimension_numbers<[1], [1], [0], [0], [0, 0, 1, 0], [], []>} : vector<8x8xf32>, vector<8x8xf32>, vector<8x8xf32> -> vector<8x8xf32>
    %cst_77 = arith.constant 0.353553385 : f32
    %200 = vector.broadcast %cst_77 : f32 to vector<8x8xf32>
    %201 = arith.mulf %199, %200 : vector<8x8xf32>
    %202 = arith.addf %201, %159 : vector<8x8xf32>
    %cst_78 = arith.constant dense<0xFF800000> : vector<8xf32>
    %203 = vector.multi_reduction <maximumf>, %202, %cst_78 [1] : vector<8x8xf32> to vector<8xf32>
    %204 = vector.shape_cast %203 : vector<8xf32> to vector<8x1xf32>
    %205 = vector.broadcast %204 : vector<8x1xf32> to vector<8x8xf32>
    %206 = arith.subf %202, %205 : vector<8x8xf32>
    %207 = math.exp %206 : vector<8x8xf32>
    %cst_79 = arith.constant dense<0.000000e+00> : vector<8xf32>
    %208 = vector.multi_reduction <add>, %207, %cst_79 [1] : vector<8x8xf32> to vector<8xf32>
    %209 = vector.shape_cast %208 : vector<8xf32> to vector<8x1xf32>
    %210 = tpu.reciprocal %209 {approx = true} : vector<8x1xf32> -> vector<8x1xf32>
    %211 = vector.broadcast %210 : vector<8x1xf32> to vector<8x8xf32>
    %212 = arith.mulf %207, %211 : vector<8x8xf32>
    %cst_80 = arith.constant dense<0.000000e+00> : vector<8x8xf32>
    %213 = tpu.matmul %212, %198, %cst_80 {dimension_numbers = #tpu.dot_dimension_numbers<[1], [0], [0], [1], [0, 0, 1, 1], [], []>} : vector<8x8xf32>, vector<8x8xf32>, vector<8x8xf32> -> vector<8x8xf32>
    %214 = vector.extract_strided_slice %151 {offsets = [0, 24], sizes = [8, 8], strides = [1, 1]} : vector<8x32xf32> to vector<8x8xf32>
    %215 = vector.extract_strided_slice %152 {offsets = [0, 24], sizes = [8, 8], strides = [1, 1]} : vector<8x32xf32> to vector<8x8xf32>
    %216 = vector.extract_strided_slice %153 {offsets = [0, 24], sizes = [8, 8], strides = [1, 1]} : vector<8x32xf32> to vector<8x8xf32>
    %cst_81 = arith.constant dense<0.000000e+00> : vector<8x8xf32>
    %217 = tpu.matmul %214, %215, %cst_81 {dimension_numbers = #tpu.dot_dimension_numbers<[1], [1], [0], [0], [0, 0, 1, 0], [], []>} : vector<8x8xf32>, vector<8x8xf32>, vector<8x8xf32> -> vector<8x8xf32>
    %cst_82 = arith.constant 0.353553385 : f32
    %218 = vector.broadcast %cst_82 : f32 to vector<8x8xf32>
    %219 = arith.mulf %217, %218 : vector<8x8xf32>
    %220 = arith.addf %219, %159 : vector<8x8xf32>
    %cst_83 = arith.constant dense<0xFF800000> : vector<8xf32>
    %221 = vector.multi_reduction <maximumf>, %220, %cst_83 [1] : vector<8x8xf32> to vector<8xf32>
    %222 = vector.shape_cast %221 : vector<8xf32> to vector<8x1xf32>
    %223 = vector.broadcast %222 : vector<8x1xf32> to vector<8x8xf32>
    %224 = arith.subf %220, %223 : vector<8x8xf32>
    %225 = math.exp %224 : vector<8x8xf32>
    %cst_84 = arith.constant dense<0.000000e+00> : vector<8xf32>
    %226 = vector.multi_reduction <add>, %225, %cst_84 [1] : vector<8x8xf32> to vector<8xf32>
    %227 = vector.shape_cast %226 : vector<8xf32> to vector<8x1xf32>
    %228 = tpu.reciprocal %227 {approx = true} : vector<8x1xf32> -> vector<8x1xf32>
    %229 = vector.broadcast %228 : vector<8x1xf32> to vector<8x8xf32>
    %230 = arith.mulf %225, %229 : vector<8x8xf32>
    %cst_85 = arith.constant dense<0.000000e+00> : vector<8x8xf32>
    %231 = tpu.matmul %230, %216, %cst_85 {dimension_numbers = #tpu.dot_dimension_numbers<[1], [0], [0], [1], [0, 0, 1, 1], [], []>} : vector<8x8xf32>, vector<8x8xf32>, vector<8x8xf32> -> vector<8x8xf32>
    %232 = tpu.concatenate %177, %195, %213, %231 in 1 : vector<8x8xf32>, vector<8x8xf32>, vector<8x8xf32>, vector<8x8xf32> -> vector<8x32xf32>
    %c0_86 = arith.constant 0 : index
    %c0_87 = arith.constant 0 : index
    %233 = vector.load %arg14[%c0_86, %c0_87] : memref<32x32xf32, #tpu.memory_space<vmem>>, vector<32x32xf32>
    %cst_88 = arith.constant dense<0.000000e+00> : vector<8x32xf32>
    %234 = tpu.matmul %232, %233, %cst_88 {dimension_numbers = #tpu.dot_dimension_numbers<[1], [0], [0], [1], [0, 0, 1, 1], [], []>} : vector<8x32xf32>, vector<32x32xf32>, vector<8x32xf32> -> vector<8x32xf32>
    %c0_89 = arith.constant 0 : index
    %c0_90 = arith.constant 0 : index
    %235 = vector.load %arg15[%c0_89, %c0_90] : memref<1x32xf32, #tpu.memory_space<vmem>>, vector<1x32xf32>
    %236 = vector.broadcast %235 : vector<1x32xf32> to vector<8x32xf32>
    %237 = arith.addf %234, %236 : vector<8x32xf32>
    %238 = vector.extract_strided_slice %145 {offsets = [0, 0], sizes = [1, 32], strides = [1, 1]} : vector<6x32xf32> to vector<1x32xf32>
    %239 = vector.extract_strided_slice %145 {offsets = [1, 0], sizes = [1, 32], strides = [1, 1]} : vector<6x32xf32> to vector<1x32xf32>
    %240 = arith.addf %237, %144 : vector<8x32xf32>
    %cst_91 = arith.constant dense<0.000000e+00> : vector<8xf32>
    %241 = vector.multi_reduction <add>, %240, %cst_91 [1] : vector<8x32xf32> to vector<8xf32>
    %242 = vector.shape_cast %241 : vector<8xf32> to vector<8x1xf32>
    %cst_92 = arith.constant 3.200000e+01 : f32
    %243 = vector.broadcast %cst_92 : f32 to vector<8x1xf32>
    %244 = arith.divf %242, %243 : vector<8x1xf32>
    %245 = vector.broadcast %244 : vector<8x1xf32> to vector<8x32xf32>
    %246 = arith.subf %240, %245 : vector<8x32xf32>
    %247 = arith.mulf %246, %246 : vector<8x32xf32>
    %cst_93 = arith.constant dense<0.000000e+00> : vector<8xf32>
    %248 = vector.multi_reduction <add>, %247, %cst_93 [1] : vector<8x32xf32> to vector<8xf32>
    %249 = vector.shape_cast %248 : vector<8xf32> to vector<8x1xf32>
    %cst_94 = arith.constant 3.200000e+01 : f32
    %250 = vector.broadcast %cst_94 : f32 to vector<8x1xf32>
    %251 = arith.divf %249, %250 : vector<8x1xf32>
    %cst_95 = arith.constant 9.99999974E-6 : f32
    %252 = vector.broadcast %cst_95 : f32 to vector<8x1xf32>
    %253 = arith.addf %251, %252 : vector<8x1xf32>
    %254 = math.rsqrt %253 : vector<8x1xf32>
    %255 = vector.broadcast %254 : vector<8x1xf32> to vector<8x32xf32>
    %256 = arith.mulf %246, %255 : vector<8x32xf32>
    %257 = vector.broadcast %238 : vector<1x32xf32> to vector<8x32xf32>
    %258 = arith.mulf %256, %257 : vector<8x32xf32>
    %259 = vector.broadcast %239 : vector<1x32xf32> to vector<8x32xf32>
    %260 = arith.addf %258, %259 : vector<8x32xf32>
    %c0_96 = arith.constant 0 : index
    %c0_97 = arith.constant 0 : index
    %261 = vector.load %arg16[%c0_96, %c0_97] : memref<32x32xf32, #tpu.memory_space<vmem>>, vector<32x32xf32>
    %cst_98 = arith.constant dense<0.000000e+00> : vector<8x32xf32>
    %262 = tpu.matmul %260, %261, %cst_98 {dimension_numbers = #tpu.dot_dimension_numbers<[1], [0], [0], [1], [0, 0, 1, 1], [], []>} : vector<8x32xf32>, vector<32x32xf32>, vector<8x32xf32> -> vector<8x32xf32>
    %c0_99 = arith.constant 0 : index
    %c0_100 = arith.constant 0 : index
    %263 = vector.load %arg17[%c0_99, %c0_100] : memref<1x32xf32, #tpu.memory_space<vmem>>, vector<1x32xf32>
    %264 = vector.broadcast %263 : vector<1x32xf32> to vector<8x32xf32>
    %265 = arith.addf %262, %264 : vector<8x32xf32>
    %c0_101 = arith.constant 0 : index
    %c0_102 = arith.constant 0 : index
    %266 = vector.load %arg18[%c0_101, %c0_102] : memref<32x64xf32, #tpu.memory_space<vmem>>, vector<32x64xf32>
    %cst_103 = arith.constant dense<0.000000e+00> : vector<8x64xf32>
    %267 = tpu.matmul %142, %266, %cst_103 {dimension_numbers = #tpu.dot_dimension_numbers<[1], [0], [0], [1], [0, 0, 1, 1], [], []>} : vector<8x32xf32>, vector<32x64xf32>, vector<8x64xf32> -> vector<8x64xf32>
    %c0_104 = arith.constant 0 : index
    %c0_105 = arith.constant 0 : index
    %268 = vector.load %arg19[%c0_104, %c0_105] : memref<1x64xf32, #tpu.memory_space<vmem>>, vector<1x64xf32>
    %269 = vector.broadcast %268 : vector<1x64xf32> to vector<8x64xf32>
    %270 = arith.addf %267, %269 : vector<8x64xf32>
    %271 = vector.extract_strided_slice %270 {offsets = [0, 0], sizes = [8, 32], strides = [1, 1]} : vector<8x64xf32> to vector<8x32xf32>
    %272 = vector.extract_strided_slice %270 {offsets = [0, 32], sizes = [8, 32], strides = [1, 1]} : vector<8x64xf32> to vector<8x32xf32>
    %273 = vector.extract_strided_slice %265 {offsets = [0, 0], sizes = [8, 8], strides = [1, 1]} : vector<8x32xf32> to vector<8x8xf32>
    %274 = vector.extract_strided_slice %271 {offsets = [0, 0], sizes = [8, 8], strides = [1, 1]} : vector<8x32xf32> to vector<8x8xf32>
    %275 = vector.extract_strided_slice %272 {offsets = [0, 0], sizes = [8, 8], strides = [1, 1]} : vector<8x32xf32> to vector<8x8xf32>
    %cst_106 = arith.constant dense<0.000000e+00> : vector<8x8xf32>
    %276 = tpu.matmul %273, %274, %cst_106 {dimension_numbers = #tpu.dot_dimension_numbers<[1], [1], [0], [0], [0, 0, 1, 0], [], []>} : vector<8x8xf32>, vector<8x8xf32>, vector<8x8xf32> -> vector<8x8xf32>
    %cst_107 = arith.constant 0.353553385 : f32
    %277 = vector.broadcast %cst_107 : f32 to vector<8x8xf32>
    %278 = arith.mulf %276, %277 : vector<8x8xf32>
    %cst_108 = arith.constant dense<0xFF800000> : vector<8xf32>
    %279 = vector.multi_reduction <maximumf>, %278, %cst_108 [1] : vector<8x8xf32> to vector<8xf32>
    %280 = vector.shape_cast %279 : vector<8xf32> to vector<8x1xf32>
    %281 = vector.broadcast %280 : vector<8x1xf32> to vector<8x8xf32>
    %282 = arith.subf %278, %281 : vector<8x8xf32>
    %283 = math.exp %282 : vector<8x8xf32>
    %cst_109 = arith.constant dense<0.000000e+00> : vector<8xf32>
    %284 = vector.multi_reduction <add>, %283, %cst_109 [1] : vector<8x8xf32> to vector<8xf32>
    %285 = vector.shape_cast %284 : vector<8xf32> to vector<8x1xf32>
    %286 = tpu.reciprocal %285 {approx = true} : vector<8x1xf32> -> vector<8x1xf32>
    %287 = vector.broadcast %286 : vector<8x1xf32> to vector<8x8xf32>
    %288 = arith.mulf %283, %287 : vector<8x8xf32>
    %cst_110 = arith.constant dense<0.000000e+00> : vector<8x8xf32>
    %289 = tpu.matmul %288, %275, %cst_110 {dimension_numbers = #tpu.dot_dimension_numbers<[1], [0], [0], [1], [0, 0, 1, 1], [], []>} : vector<8x8xf32>, vector<8x8xf32>, vector<8x8xf32> -> vector<8x8xf32>
    %290 = vector.extract_strided_slice %265 {offsets = [0, 8], sizes = [8, 8], strides = [1, 1]} : vector<8x32xf32> to vector<8x8xf32>
    %291 = vector.extract_strided_slice %271 {offsets = [0, 8], sizes = [8, 8], strides = [1, 1]} : vector<8x32xf32> to vector<8x8xf32>
    %292 = vector.extract_strided_slice %272 {offsets = [0, 8], sizes = [8, 8], strides = [1, 1]} : vector<8x32xf32> to vector<8x8xf32>
    %cst_111 = arith.constant dense<0.000000e+00> : vector<8x8xf32>
    %293 = tpu.matmul %290, %291, %cst_111 {dimension_numbers = #tpu.dot_dimension_numbers<[1], [1], [0], [0], [0, 0, 1, 0], [], []>} : vector<8x8xf32>, vector<8x8xf32>, vector<8x8xf32> -> vector<8x8xf32>
    %cst_112 = arith.constant 0.353553385 : f32
    %294 = vector.broadcast %cst_112 : f32 to vector<8x8xf32>
    %295 = arith.mulf %293, %294 : vector<8x8xf32>
    %cst_113 = arith.constant dense<0xFF800000> : vector<8xf32>
    %296 = vector.multi_reduction <maximumf>, %295, %cst_113 [1] : vector<8x8xf32> to vector<8xf32>
    %297 = vector.shape_cast %296 : vector<8xf32> to vector<8x1xf32>
    %298 = vector.broadcast %297 : vector<8x1xf32> to vector<8x8xf32>
    %299 = arith.subf %295, %298 : vector<8x8xf32>
    %300 = math.exp %299 : vector<8x8xf32>
    %cst_114 = arith.constant dense<0.000000e+00> : vector<8xf32>
    %301 = vector.multi_reduction <add>, %300, %cst_114 [1] : vector<8x8xf32> to vector<8xf32>
    %302 = vector.shape_cast %301 : vector<8xf32> to vector<8x1xf32>
    %303 = tpu.reciprocal %302 {approx = true} : vector<8x1xf32> -> vector<8x1xf32>
    %304 = vector.broadcast %303 : vector<8x1xf32> to vector<8x8xf32>
    %305 = arith.mulf %300, %304 : vector<8x8xf32>
    %cst_115 = arith.constant dense<0.000000e+00> : vector<8x8xf32>
    %306 = tpu.matmul %305, %292, %cst_115 {dimension_numbers = #tpu.dot_dimension_numbers<[1], [0], [0], [1], [0, 0, 1, 1], [], []>} : vector<8x8xf32>, vector<8x8xf32>, vector<8x8xf32> -> vector<8x8xf32>
    %307 = vector.extract_strided_slice %265 {offsets = [0, 16], sizes = [8, 8], strides = [1, 1]} : vector<8x32xf32> to vector<8x8xf32>
    %308 = vector.extract_strided_slice %271 {offsets = [0, 16], sizes = [8, 8], strides = [1, 1]} : vector<8x32xf32> to vector<8x8xf32>
    %309 = vector.extract_strided_slice %272 {offsets = [0, 16], sizes = [8, 8], strides = [1, 1]} : vector<8x32xf32> to vector<8x8xf32>
    %cst_116 = arith.constant dense<0.000000e+00> : vector<8x8xf32>
    %310 = tpu.matmul %307, %308, %cst_116 {dimension_numbers = #tpu.dot_dimension_numbers<[1], [1], [0], [0], [0, 0, 1, 0], [], []>} : vector<8x8xf32>, vector<8x8xf32>, vector<8x8xf32> -> vector<8x8xf32>
    %cst_117 = arith.constant 0.353553385 : f32
    %311 = vector.broadcast %cst_117 : f32 to vector<8x8xf32>
    %312 = arith.mulf %310, %311 : vector<8x8xf32>
    %cst_118 = arith.constant dense<0xFF800000> : vector<8xf32>
    %313 = vector.multi_reduction <maximumf>, %312, %cst_118 [1] : vector<8x8xf32> to vector<8xf32>
    %314 = vector.shape_cast %313 : vector<8xf32> to vector<8x1xf32>
    %315 = vector.broadcast %314 : vector<8x1xf32> to vector<8x8xf32>
    %316 = arith.subf %312, %315 : vector<8x8xf32>
    %317 = math.exp %316 : vector<8x8xf32>
    %cst_119 = arith.constant dense<0.000000e+00> : vector<8xf32>
    %318 = vector.multi_reduction <add>, %317, %cst_119 [1] : vector<8x8xf32> to vector<8xf32>
    %319 = vector.shape_cast %318 : vector<8xf32> to vector<8x1xf32>
    %320 = tpu.reciprocal %319 {approx = true} : vector<8x1xf32> -> vector<8x1xf32>
    %321 = vector.broadcast %320 : vector<8x1xf32> to vector<8x8xf32>
    %322 = arith.mulf %317, %321 : vector<8x8xf32>
    %cst_120 = arith.constant dense<0.000000e+00> : vector<8x8xf32>
    %323 = tpu.matmul %322, %309, %cst_120 {dimension_numbers = #tpu.dot_dimension_numbers<[1], [0], [0], [1], [0, 0, 1, 1], [], []>} : vector<8x8xf32>, vector<8x8xf32>, vector<8x8xf32> -> vector<8x8xf32>
    %324 = vector.extract_strided_slice %265 {offsets = [0, 24], sizes = [8, 8], strides = [1, 1]} : vector<8x32xf32> to vector<8x8xf32>
    %325 = vector.extract_strided_slice %271 {offsets = [0, 24], sizes = [8, 8], strides = [1, 1]} : vector<8x32xf32> to vector<8x8xf32>
    %326 = vector.extract_strided_slice %272 {offsets = [0, 24], sizes = [8, 8], strides = [1, 1]} : vector<8x32xf32> to vector<8x8xf32>
    %cst_121 = arith.constant dense<0.000000e+00> : vector<8x8xf32>
    %327 = tpu.matmul %324, %325, %cst_121 {dimension_numbers = #tpu.dot_dimension_numbers<[1], [1], [0], [0], [0, 0, 1, 0], [], []>} : vector<8x8xf32>, vector<8x8xf32>, vector<8x8xf32> -> vector<8x8xf32>
    %cst_122 = arith.constant 0.353553385 : f32
    %328 = vector.broadcast %cst_122 : f32 to vector<8x8xf32>
    %329 = arith.mulf %327, %328 : vector<8x8xf32>
    %cst_123 = arith.constant dense<0xFF800000> : vector<8xf32>
    %330 = vector.multi_reduction <maximumf>, %329, %cst_123 [1] : vector<8x8xf32> to vector<8xf32>
    %331 = vector.shape_cast %330 : vector<8xf32> to vector<8x1xf32>
    %332 = vector.broadcast %331 : vector<8x1xf32> to vector<8x8xf32>
    %333 = arith.subf %329, %332 : vector<8x8xf32>
    %334 = math.exp %333 : vector<8x8xf32>
    %cst_124 = arith.constant dense<0.000000e+00> : vector<8xf32>
    %335 = vector.multi_reduction <add>, %334, %cst_124 [1] : vector<8x8xf32> to vector<8xf32>
    %336 = vector.shape_cast %335 : vector<8xf32> to vector<8x1xf32>
    %337 = tpu.reciprocal %336 {approx = true} : vector<8x1xf32> -> vector<8x1xf32>
    %338 = vector.broadcast %337 : vector<8x1xf32> to vector<8x8xf32>
    %339 = arith.mulf %334, %338 : vector<8x8xf32>
    %cst_125 = arith.constant dense<0.000000e+00> : vector<8x8xf32>
    %340 = tpu.matmul %339, %326, %cst_125 {dimension_numbers = #tpu.dot_dimension_numbers<[1], [0], [0], [1], [0, 0, 1, 1], [], []>} : vector<8x8xf32>, vector<8x8xf32>, vector<8x8xf32> -> vector<8x8xf32>
    %341 = tpu.concatenate %289, %306, %323, %340 in 1 : vector<8x8xf32>, vector<8x8xf32>, vector<8x8xf32>, vector<8x8xf32> -> vector<8x32xf32>
    %c0_126 = arith.constant 0 : index
    %c0_127 = arith.constant 0 : index
    %342 = vector.load %arg20[%c0_126, %c0_127] : memref<32x32xf32, #tpu.memory_space<vmem>>, vector<32x32xf32>
    %cst_128 = arith.constant dense<0.000000e+00> : vector<8x32xf32>
    %343 = tpu.matmul %341, %342, %cst_128 {dimension_numbers = #tpu.dot_dimension_numbers<[1], [0], [0], [1], [0, 0, 1, 1], [], []>} : vector<8x32xf32>, vector<32x32xf32>, vector<8x32xf32> -> vector<8x32xf32>
    %c0_129 = arith.constant 0 : index
    %c0_130 = arith.constant 0 : index
    %344 = vector.load %arg21[%c0_129, %c0_130] : memref<1x32xf32, #tpu.memory_space<vmem>>, vector<1x32xf32>
    %345 = vector.broadcast %344 : vector<1x32xf32> to vector<8x32xf32>
    %346 = arith.addf %343, %345 : vector<8x32xf32>
    %347 = vector.extract_strided_slice %145 {offsets = [2, 0], sizes = [1, 32], strides = [1, 1]} : vector<6x32xf32> to vector<1x32xf32>
    %348 = vector.extract_strided_slice %145 {offsets = [3, 0], sizes = [1, 32], strides = [1, 1]} : vector<6x32xf32> to vector<1x32xf32>
    %349 = arith.addf %346, %260 : vector<8x32xf32>
    %cst_131 = arith.constant dense<0.000000e+00> : vector<8xf32>
    %350 = vector.multi_reduction <add>, %349, %cst_131 [1] : vector<8x32xf32> to vector<8xf32>
    %351 = vector.shape_cast %350 : vector<8xf32> to vector<8x1xf32>
    %cst_132 = arith.constant 3.200000e+01 : f32
    %352 = vector.broadcast %cst_132 : f32 to vector<8x1xf32>
    %353 = arith.divf %351, %352 : vector<8x1xf32>
    %354 = vector.broadcast %353 : vector<8x1xf32> to vector<8x32xf32>
    %355 = arith.subf %349, %354 : vector<8x32xf32>
    %356 = arith.mulf %355, %355 : vector<8x32xf32>
    %cst_133 = arith.constant dense<0.000000e+00> : vector<8xf32>
    %357 = vector.multi_reduction <add>, %356, %cst_133 [1] : vector<8x32xf32> to vector<8xf32>
    %358 = vector.shape_cast %357 : vector<8xf32> to vector<8x1xf32>
    %cst_134 = arith.constant 3.200000e+01 : f32
    %359 = vector.broadcast %cst_134 : f32 to vector<8x1xf32>
    %360 = arith.divf %358, %359 : vector<8x1xf32>
    %cst_135 = arith.constant 9.99999974E-6 : f32
    %361 = vector.broadcast %cst_135 : f32 to vector<8x1xf32>
    %362 = arith.addf %360, %361 : vector<8x1xf32>
    %363 = math.rsqrt %362 : vector<8x1xf32>
    %364 = vector.broadcast %363 : vector<8x1xf32> to vector<8x32xf32>
    %365 = arith.mulf %355, %364 : vector<8x32xf32>
    %366 = vector.broadcast %347 : vector<1x32xf32> to vector<8x32xf32>
    %367 = arith.mulf %365, %366 : vector<8x32xf32>
    %368 = vector.broadcast %348 : vector<1x32xf32> to vector<8x32xf32>
    %369 = arith.addf %367, %368 : vector<8x32xf32>
    %c0_136 = arith.constant 0 : index
    %c0_137 = arith.constant 0 : index
    %370 = vector.load %arg22[%c0_136, %c0_137] : memref<32x64xf32, #tpu.memory_space<vmem>>, vector<32x64xf32>
    %c0_138 = arith.constant 0 : index
    %c0_139 = arith.constant 0 : index
    %371 = vector.load %arg23[%c0_138, %c0_139] : memref<1x64xf32, #tpu.memory_space<vmem>>, vector<1x64xf32>
    %c0_140 = arith.constant 0 : index
    %c0_141 = arith.constant 0 : index
    %372 = vector.load %arg24[%c0_140, %c0_141] : memref<64x32xf32, #tpu.memory_space<vmem>>, vector<64x32xf32>
    %c0_142 = arith.constant 0 : index
    %c0_143 = arith.constant 0 : index
    %373 = vector.load %arg25[%c0_142, %c0_143] : memref<1x32xf32, #tpu.memory_space<vmem>>, vector<1x32xf32>
    %cst_144 = arith.constant dense<0.000000e+00> : vector<8x64xf32>
    %374 = tpu.matmul %369, %370, %cst_144 {dimension_numbers = #tpu.dot_dimension_numbers<[1], [0], [0], [1], [0, 0, 1, 1], [], []>} : vector<8x32xf32>, vector<32x64xf32>, vector<8x64xf32> -> vector<8x64xf32>
    %375 = vector.broadcast %371 : vector<1x64xf32> to vector<8x64xf32>
    %376 = arith.addf %374, %375 : vector<8x64xf32>
    %cst_145 = arith.constant 0.000000e+00 : f32
    %377 = vector.broadcast %cst_145 : f32 to vector<8x64xf32>
    %378 = arith.maximumf %376, %377 : vector<8x64xf32>
    %cst_146 = arith.constant dense<0.000000e+00> : vector<8x32xf32>
    %379 = tpu.matmul %378, %372, %cst_146 {dimension_numbers = #tpu.dot_dimension_numbers<[1], [0], [0], [1], [0, 0, 1, 1], [], []>} : vector<8x64xf32>, vector<64x32xf32>, vector<8x32xf32> -> vector<8x32xf32>
    %380 = vector.broadcast %373 : vector<1x32xf32> to vector<8x32xf32>
    %381 = arith.addf %379, %380 : vector<8x32xf32>
    %382 = vector.extract_strided_slice %145 {offsets = [4, 0], sizes = [1, 32], strides = [1, 1]} : vector<6x32xf32> to vector<1x32xf32>
    %383 = vector.extract_strided_slice %145 {offsets = [5, 0], sizes = [1, 32], strides = [1, 1]} : vector<6x32xf32> to vector<1x32xf32>
    %384 = arith.addf %381, %369 : vector<8x32xf32>
    %cst_147 = arith.constant dense<0.000000e+00> : vector<8xf32>
    %385 = vector.multi_reduction <add>, %384, %cst_147 [1] : vector<8x32xf32> to vector<8xf32>
    %386 = vector.shape_cast %385 : vector<8xf32> to vector<8x1xf32>
    %cst_148 = arith.constant 3.200000e+01 : f32
    %387 = vector.broadcast %cst_148 : f32 to vector<8x1xf32>
    %388 = arith.divf %386, %387 : vector<8x1xf32>
    %389 = vector.broadcast %388 : vector<8x1xf32> to vector<8x32xf32>
    %390 = arith.subf %384, %389 : vector<8x32xf32>
    %391 = arith.mulf %390, %390 : vector<8x32xf32>
    %cst_149 = arith.constant dense<0.000000e+00> : vector<8xf32>
    %392 = vector.multi_reduction <add>, %391, %cst_149 [1] : vector<8x32xf32> to vector<8xf32>
    %393 = vector.shape_cast %392 : vector<8xf32> to vector<8x1xf32>
    %cst_150 = arith.constant 3.200000e+01 : f32
    %394 = vector.broadcast %cst_150 : f32 to vector<8x1xf32>
    %395 = arith.divf %393, %394 : vector<8x1xf32>
    %cst_151 = arith.constant 9.99999974E-6 : f32
    %396 = vector.broadcast %cst_151 : f32 to vector<8x1xf32>
    %397 = arith.addf %395, %396 : vector<8x1xf32>
    %398 = math.rsqrt %397 : vector<8x1xf32>
    %399 = vector.broadcast %398 : vector<8x1xf32> to vector<8x32xf32>
    %400 = arith.mulf %390, %399 : vector<8x32xf32>
    %401 = vector.broadcast %382 : vector<1x32xf32> to vector<8x32xf32>
    %402 = arith.mulf %400, %401 : vector<8x32xf32>
    %403 = vector.broadcast %383 : vector<1x32xf32> to vector<8x32xf32>
    %404 = arith.addf %402, %403 : vector<8x32xf32>
    %405 = vector.extract_strided_slice %404 {offsets = [7, 0], sizes = [1, 32], strides = [1, 1]} : vector<8x32xf32> to vector<1x32xf32>
    %c0_152 = arith.constant 0 : index
    %c0_153 = arith.constant 0 : index
    %406 = vector.load %arg27[%c0_152, %c0_153] : memref<128x32xf32, #tpu.memory_space<vmem>>, vector<128x32xf32>
    %cst_154 = arith.constant dense<0.000000e+00> : vector<1x128xf32>
    %407 = tpu.matmul %405, %406, %cst_154 {dimension_numbers = #tpu.dot_dimension_numbers<[1], [1], [0], [0], [0, 0, 1, 0], [], []>} : vector<1x32xf32>, vector<128x32xf32>, vector<1x128xf32> -> vector<1x128xf32>
    %c0_155 = arith.constant 0 : index
    %c0_156 = arith.constant 0 : index
    %408 = vector.load %arg28[%c0_155, %c0_156] : memref<1x128xf32, #tpu.memory_space<vmem>>, vector<1x128xf32>
    %409 = arith.addf %407, %408 : vector<1x128xf32>
    %410 = vector.shape_cast %409 : vector<1x128xf32> to vector<1x1x128xf32>
    %c0_157 = arith.constant 0 : index
    %c0_158 = arith.constant 0 : index
    %c0_159 = arith.constant 0 : index
    %411 = vector.load %arg29[%c0_157, %c0_158, %c0_159] : memref<1x1x128xf32, #tpu.memory_space<vmem>>, vector<1x1x128xf32>
    tpu.vector_store %arg29[%c0_157, %c0_158, %c0_159], %410 {strides = array<i32>} : memref<1x1x128xf32, #tpu.memory_space<vmem>>, vector<1x1x128xf32>,
    return
  }
  func.func @transform_0(%arg0: i32) -> (i32, i32, i32) {
    %c0_i32 = arith.constant 0 : i32
    %c0_i32_0 = arith.constant 0 : i32
    %c0_i32_1 = arith.constant 0 : i32
    return %arg0, %c0_i32, %c0_i32_0 : i32, i32, i32
  }
  func.func @transform_1(%arg0: i32) -> (i32, i32, i32) {
    %c0_i32 = arith.constant 0 : i32
    %c0_i32_0 = arith.constant 0 : i32
    %c0_i32_1 = arith.constant 0 : i32
    return %arg0, %c0_i32, %c0_i32_0 : i32, i32, i32
  }
  func.func @transform_2(%arg0: i32) -> (i32, i32) {
    %c0_i32 = arith.constant 0 : i32
    %c0_i32_0 = arith.constant 0 : i32
    %c0_i32_1 = arith.constant 0 : i32
    return %c0_i32, %c0_i32_0 : i32, i32
  }
  func.func @transform_3(%arg0: i32) -> (i32, i32) {
    %c0_i32 = arith.constant 0 : i32
    %c0_i32_0 = arith.constant 0 : i32
    %c0_i32_1 = arith.constant 0 : i32
    return %c0_i32, %c0_i32_0 : i32, i32
  }
  func.func @transform_4(%arg0: i32) -> (i32, i32) {
    %c0_i32 = arith.constant 0 : i32
    %c0_i32_0 = arith.constant 0 : i32
    %c0_i32_1 = arith.constant 0 : i32
    return %c0_i32, %c0_i32_0 : i32, i32
  }
  func.func @transform_5(%arg0: i32) -> (i32, i32) {
    %c0_i32 = arith.constant 0 : i32
    %c0_i32_0 = arith.constant 0 : i32
    %c0_i32_1 = arith.constant 0 : i32
    return %c0_i32, %c0_i32_0 : i32, i32
  }
  func.func @transform_6(%arg0: i32) -> (i32, i32) {
    %c0_i32 = arith.constant 0 : i32
    %c0_i32_0 = arith.constant 0 : i32
    %c0_i32_1 = arith.constant 0 : i32
    return %c0_i32, %c0_i32_0 : i32, i32
  }
  func.func @transform_7(%arg0: i32) -> (i32, i32) {
    %c0_i32 = arith.constant 0 : i32
    %c0_i32_0 = arith.constant 0 : i32
    %c0_i32_1 = arith.constant 0 : i32
    return %c0_i32, %c0_i32_0 : i32, i32
  }
  func.func @transform_8(%arg0: i32) -> (i32, i32) {
    %c0_i32 = arith.constant 0 : i32
    %c0_i32_0 = arith.constant 0 : i32
    %c0_i32_1 = arith.constant 0 : i32
    return %c0_i32, %c0_i32_0 : i32, i32
  }
  func.func @transform_9(%arg0: i32) -> (i32, i32) {
    %c0_i32 = arith.constant 0 : i32
    %c0_i32_0 = arith.constant 0 : i32
    %c0_i32_1 = arith.constant 0 : i32
    return %c0_i32, %c0_i32_0 : i32, i32
  }
  func.func @transform_10(%arg0: i32) -> (i32, i32) {
    %c0_i32 = arith.constant 0 : i32
    %c0_i32_0 = arith.constant 0 : i32
    %c0_i32_1 = arith.constant 0 : i32
    return %c0_i32, %c0_i32_0 : i32, i32
  }
  func.func @transform_11(%arg0: i32) -> (i32, i32) {
    %c0_i32 = arith.constant 0 : i32
    %c0_i32_0 = arith.constant 0 : i32
    %c0_i32_1 = arith.constant 0 : i32
    return %c0_i32, %c0_i32_0 : i32, i32
  }
  func.func @transform_12(%arg0: i32) -> (i32, i32) {
    %c0_i32 = arith.constant 0 : i32
    %c0_i32_0 = arith.constant 0 : i32
    %c0_i32_1 = arith.constant 0 : i32
    return %c0_i32, %c0_i32_0 : i32, i32
  }
  func.func @transform_13(%arg0: i32) -> (i32, i32) {
    %c0_i32 = arith.constant 0 : i32
    %c0_i32_0 = arith.constant 0 : i32
    %c0_i32_1 = arith.constant 0 : i32
    return %c0_i32, %c0_i32_0 : i32, i32
  }
  func.func @transform_14(%arg0: i32) -> (i32, i32) {
    %c0_i32 = arith.constant 0 : i32
    %c0_i32_0 = arith.constant 0 : i32
    %c0_i32_1 = arith.constant 0 : i32
    return %c0_i32, %c0_i32_0 : i32, i32
  }
  func.func @transform_15(%arg0: i32) -> (i32, i32) {
    %c0_i32 = arith.constant 0 : i32
    %c0_i32_0 = arith.constant 0 : i32
    %c0_i32_1 = arith.constant 0 : i32
    return %c0_i32, %c0_i32_0 : i32, i32
  }
  func.func @transform_16(%arg0: i32) -> (i32, i32) {
    %c0_i32 = arith.constant 0 : i32
    %c0_i32_0 = arith.constant 0 : i32
    %c0_i32_1 = arith.constant 0 : i32
    return %c0_i32, %c0_i32_0 : i32, i32
  }
  func.func @transform_17(%arg0: i32) -> (i32, i32) {
    %c0_i32 = arith.constant 0 : i32
    %c0_i32_0 = arith.constant 0 : i32
    %c0_i32_1 = arith.constant 0 : i32
    return %c0_i32, %c0_i32_0 : i32, i32
  }
  func.func @transform_18(%arg0: i32) -> (i32, i32) {
    %c0_i32 = arith.constant 0 : i32
    %c0_i32_0 = arith.constant 0 : i32
    %c0_i32_1 = arith.constant 0 : i32
    return %c0_i32, %c0_i32_0 : i32, i32
  }
  func.func @transform_19(%arg0: i32) -> (i32, i32) {
    %c0_i32 = arith.constant 0 : i32
    %c0_i32_0 = arith.constant 0 : i32
    %c0_i32_1 = arith.constant 0 : i32
    return %c0_i32, %c0_i32_0 : i32, i32
  }
  func.func @transform_20(%arg0: i32) -> (i32, i32) {
    %c0_i32 = arith.constant 0 : i32
    %c0_i32_0 = arith.constant 0 : i32
    %c0_i32_1 = arith.constant 0 : i32
    return %c0_i32, %c0_i32_0 : i32, i32
  }
  func.func @transform_21(%arg0: i32) -> (i32, i32) {
    %c0_i32 = arith.constant 0 : i32
    %c0_i32_0 = arith.constant 0 : i32
    %c0_i32_1 = arith.constant 0 : i32
    return %c0_i32, %c0_i32_0 : i32, i32
  }
  func.func @transform_22(%arg0: i32) -> (i32, i32) {
    %c0_i32 = arith.constant 0 : i32
    %c0_i32_0 = arith.constant 0 : i32
    %c0_i32_1 = arith.constant 0 : i32
    return %c0_i32, %c0_i32_0 : i32, i32
  }
  func.func @transform_23(%arg0: i32) -> (i32, i32) {
    %c0_i32 = arith.constant 0 : i32
    %c0_i32_0 = arith.constant 0 : i32
    %c0_i32_1 = arith.constant 0 : i32
    return %c0_i32, %c0_i32_0 : i32, i32
  }
  func.func @transform_24(%arg0: i32) -> (i32, i32) {
    %c0_i32 = arith.constant 0 : i32
    %c0_i32_0 = arith.constant 0 : i32
    %c0_i32_1 = arith.constant 0 : i32
    return %c0_i32, %c0_i32_0 : i32, i32
  }
  func.func @transform_25(%arg0: i32) -> (i32, i32) {
    %c0_i32 = arith.constant 0 : i32
    %c0_i32_0 = arith.constant 0 : i32
    %c0_i32_1 = arith.constant 0 : i32
    return %c0_i32, %c0_i32_0 : i32, i32
  }
  func.func @transform_26(%arg0: i32) -> (i32, i32) {
    %c0_i32 = arith.constant 0 : i32
    %c0_i32_0 = arith.constant 0 : i32
    %c0_i32_1 = arith.constant 0 : i32
    return %c0_i32, %c0_i32_0 : i32, i32
  }
  func.func @transform_27(%arg0: i32) -> (i32, i32) {
    %c0_i32 = arith.constant 0 : i32
    %c0_i32_0 = arith.constant 0 : i32
    %c0_i32_1 = arith.constant 0 : i32
    return %c0_i32, %c0_i32_0 : i32, i32
  }
  func.func @transform_28(%arg0: i32) -> (i32, i32, i32) {
    %c0_i32 = arith.constant 0 : i32
    %c0_i32_0 = arith.constant 0 : i32
    %c0_i32_1 = arith.constant 0 : i32
    return %arg0, %c0_i32, %c0_i32_0 : i32, i32, i32
  }
}

</mosaic_0001>

<bundles_post_ra>
// kernel: translator_forward.1
= control target key start
LH: loop header
LB: loop body
LE: loop exit
PB: predicated region body
PF: predicated region fallthrough
CT: control target
= control target key end

     0   :  { %s5686_s0 = inlined_call_operand.vmem [shape: f32[2,8,32], index: 0, kind: input, shape index: {}]   ;;  %s5687_s1 = inlined_call_operand.vmem [shape: f32[2,8,32], index: 1, kind: input, shape index: {}]   ;;  %s5688_s2 = inlined_call_operand.vmem [shape: f32[32,96], index: 2, kind: input, shape index: {}]   ;;  %s5689_s3 = inlined_call_operand.vmem [shape: f32[1,96], index: 3, kind: input, shape index: {}]   ;;  %s5690_s4 = inlined_call_operand.vmem [shape: f32[32,32], index: 4, kind: input, shape index: {}]   ;;  %s5691_s5 = inlined_call_operand.vmem [shape: f32[1,32], index: 5, kind: input, shape index: {}]   ;;  %s5692_s6 = inlined_call_operand.vmem [shape: f32[4,32], index: 6, kind: input, shape index: {}]   ;;  %s5693_s7 = inlined_call_operand.vmem [shape: f32[32,64], index: 7, kind: input, shape index: {}]   ;;  %s5694_s8 = inlined_call_operand.vmem [shape: f32[1,64], index: 8, kind: input, shape index: {}]   ;;  %s5695_s9 = inlined_call_operand.vmem [shape: f32[64,32], index: 9, kind: input, shape index: {}]   ;;  %s5696_s10 = inlined_call_operand.vmem [shape: f32[1,32], index: 10, kind: input, shape index: {}]   ;;  %s5697_s11 = inlined_call_operand.vmem [shape: f32[32,96], index: 11, kind: input, shape index: {}]   ;;  %s5698_s12 = inlined_call_operand.vmem [shape: f32[1,96], index: 12, kind: input, shape index: {}]   ;;  %s5699_s13 = inlined_call_operand.vmem [shape: f32[32,32], index: 13, kind: input, shape index: {}]   ;;  %s5700_s14 = inlined_call_operand.vmem [shape: f32[1,32], index: 14, kind: input, shape index: {}]   ;;  %s5701_s15 = inlined_call_operand.vmem [shape: f32[32,32], index: 15, kind: input, shape index: {}]   ;;  %s5702_s16 = inlined_call_operand.vmem [shape: f32[1,32], index: 16, kind: input, shape index: {}]   ;;  %s5703_s17 = inlined_call_operand.vmem [shape: f32[32,64], index: 17, kind: input, shape index: {}]   ;;  %s5704_s18 = inlined_call_operand.vmem [shape: f32[1,64], index: 18, kind: input, shape index: {}]   ;;  %s5705_s19 = inlined_call_operand.vmem [shape: f32[32,32], index: 19, kind: input, shape index: {}]   ;;  %s5706_s20 = inlined_call_operand.vmem [shape: f32[1,32], index: 20, kind: input, shape index: {}]   ;;  %s5707_s21 = inlined_call_operand.vmem [shape: f32[32,64], index: 21, kind: input, shape index: {}]   ;;  %s5708_s22 = inlined_call_operand.vmem [shape: f32[1,64], index: 22, kind: input, shape index: {}]   ;;  %s5709_s23 = inlined_call_operand.vmem [shape: f32[64,32], index: 23, kind: input, shape index: {}]   ;;  %s5710_s24 = inlined_call_operand.vmem [shape: f32[1,32], index: 24, kind: input, shape index: {}]   ;;  %s5711_s25 = inlined_call_operand.vmem [shape: f32[6,32], index: 25, kind: input, shape index: {}]   ;;  %s5712_s26 = inlined_call_operand.vmem [shape: f32[128,32], index: 26, kind: input, shape index: {}]   ;;  %s5713_s27 = inlined_call_operand.vmem [shape: f32[1,128], index: 27, kind: input, shape index: {}]   ;;  %s5714_s28 = inlined_call_operand.vmem [shape: f32[2,1,128], index: 28, kind: output, shape index: {}]  }
   0x1   :  { %5751 = sst [smem:[#allocation3_spill]] %s5686_s0 }
   0x2   :  { %5752 = sst [smem:[#allocation4_spill]] %s5687_s1 }
   0x3   :  { %5753 = sst [smem:[#allocation5_spill]] %s5688_s2 }
   0x4   :  { %5754 = sst [smem:[#allocation6_spill]] %s5689_s3 }
   0x5   :  { %5755 = sst [smem:[#allocation7_spill]] %s5690_s4 }
   0x6   :  { %5756 = sst [smem:[#allocation8_spill]] %s5691_s5 }
   0x7   :  { %5757 = sst [smem:[#allocation9_spill]] %s5692_s6 }
   0x8   :  { %5758 = sst [smem:[#allocation10_spill]] %s5693_s7 }
   0x9   :  { %5759 = sst [smem:[#allocation11_spill]] %s5694_s8  ;;  %s5029_s8 = smov 0  }
   0xa   :  { %5760 = sst [smem:[#allocation12_spill]] %s5695_s9 }
   0xb   :  { %5761 = sst [smem:[#allocation13_spill]] %s5696_s10 }
   0xc   :  { %5762 = sst [smem:[#allocation14_spill]] %s5697_s11 }
   0xd   :  { %5763 = sst [smem:[#allocation15_spill]] %s5698_s12 }
   0xe   :  { %5764 = sst [smem:[#allocation16_spill]] %s5699_s13 }
   0xf   :  { %5765 = sst [smem:[#allocation17_spill]] %s5700_s14 }
  0x10   :  { %5766 = sst [smem:[#allocation18_spill]] %s5713_s27 }
  0x11   :  { %5767 = sst [smem:[#allocation19_spill]] %s5714_s28 }
  0x12 LB: > { %5768 = sst [smem:[#allocation2_spill]] %s4865_s8  ;;  %s4162_s5 = sadd.s32 4294967295, %s4865_s8   ;;  %s4865_s8 = sphi %s5029_s8, %s38_s8  }
  0x13   : > { %p4166_p0 = scmp.ge.s32.totalorder %s4865_s8, 1  ;;  %p770_p1 = scmp.lt.s32.totalorder %s4865_s8, 3 }
  0x15   : > { %p771_p2 = pnand %p4166_p0, %p770_p1 }
  0x16   : > { %s5769_s3 = sld [smem:[#allocation5_spill]] (!%p771_p2)  ;;  %v4867_v3 = vmov (!%p771_p2), 0.0|0.0   ;;  %vm4868_vm0 = vmmov (!%p771_p2), 0   ;;  %v4869_v6 = vmov (!%p771_p2), 0.0   ;;  %p845_p3 = scmp.lt.s32.totalorder (!%p771_p2), %s4162_s5, 1  ;;  %vm868_vm1 = vcmask (!%p771_p2), 261120  }
  0x17   : > { %774 = sbr.rel (%p771_p2) target bundleno = 6508 (0x196c), region = 132  ;;  %4666 = vmatprep.subr.bf16.mxu0 (!%p771_p2), %v4867_v3  ;;  %4382 = vmatprep.mubr.msk.f32.mxu0 (!%p771_p2), %vm4868_vm0, %v4869_v6  ;;  %s5770_s4 = sld [smem:[#allocation3_spill]] (!%p771_p2)  ;;  %vm945_vm2 = vcmask (!%p771_p2), 64512   ;;  %vm1619_vm3 = vcmask (!%p771_p2), 130048   ;;  %vm1621_vm4 = vcmask (!%p771_p2), 195584   ;;  %vm1833_vm5 = vcmask (!%p771_p2), 523264   ;;  %vm5601_vm7 = vmpackc.low (!%p771_p2), %vm868_vm1, %vm868_vm1 }
  0x18   : > { %4385 = vmatprep.subr.mxu1 (!%p771_p2), %v4869_v6  ;;  %4387 = vmatprep.mubr.msk.f32.mxu1 (!%p771_p2), %vm4868_vm0, %v4869_v6  ;;  %s5771_s10 = sld [smem:[#allocation6_spill]] (!%p771_p2)  ;;  %s5730_s0 = smov (!%p771_p2), 120  }
  0x19   : > { %s5740_s11 = smov (!%p771_p2), 96   ;;  %s5738_s29 = smov (!%p771_p2), 80  }
  0x1a   : > { %s5742_s2 = smov (!%p771_p2), 88   ;;  %s5728_s12 = smov (!%p771_p2), 72  }
  0x1b   : > { %s5726_s1 = smov (!%p771_p2), 112   ;;  %s5722_s30 = smov (!%p771_p2), 64  }
  0x1c   : > { %v857_v0 = vld [vmem:[%s5769_s3] sm:$0xff] (!%p771_p2)  ;;  %v858_v1 = vld [vmem:[%s5769_s3 + $0x8] sm:$0xff] (!%p771_p2)  ;;  %v859_v2 = vld [vmem:[%s5769_s3 + $0x10] sm:$0xff] (!%p771_p2)  ;;  %s5721_s6 = smov (!%p771_p2), 48   ;;  %s5793_s13 = sld [smem:[#allocation16_spill]] (!%p771_p2) }
  0x1d   : > { %v4667_v4 = vpack.c.bf16 (!%p771_p2), %v858_v1, %v857_v0  ;;  %v860_v5 = vld [vmem:[%s5769_s3 + $0x18] sm:$0xff] (!%p771_p2)  ;;  %s5778_s3 = sld [smem:[#allocation14_spill]] (!%p771_p2)  ;;  %s5797_s8 = sld [smem:[#allocation13_spill]] (!%p771_p2) }
  0x1e   : > { %v4670_v7 = vpack.c.bf16 %v860_v5, %v859_v2  ;;  %s5805_s5 = smov (!%p845_p3, %s4162_s5), 1  ;;  %v4169_v9 = vld [vmem:[%s5771_s10] ss:$0 sm:$0xff]  ;;  %s5720_s10 = smov 40  }
  0x1f   : > { %4668 = vmatpush3.bf16.msra.mxu0 %v4667_v4  ;;  %s5744_s7 = sshll.u32 %s5805_s5, 3  ;;  %s5798_s14 = sld [smem:[#allocation17_spill]] }
  0x20   : > { %4669 = vmatprep.subr.bf16.mxu0 %v4867_v3  ;;  %s848_s9 = scalar_lea.vmem %s5770_s4, %s5744_s7  ;;  %s5724_s4 = smov 104  }
  0x21   : > { %v5064_v8 = vld [vmem:[%s848_s9] sm:$0xff]  ;;  %s5723_s9 = smov 56   ;;  %s5779_s7 = sshll.u32 %s5805_s5, 3 }
  0x23   : > { %4671 = vmatpush3.bf16.msra.mxu0 %v4670_v7 }
  0x24   : > { %4395 = vmatprep.subr.mxu0 %v4869_v6 }
  0x26   : > { %4383 = vmatmul.mubr.msk.f32.vlgmr.msra.gmra.mrb[0].mxu0 %vm868_vm1, %v5064_v8 }
  0x27   : > { %4397 = vmatprep.mubr.msk.f32.mxu0 %vm4868_vm0, %v4869_v6 }
  0xf9   : > { %v938_v10 = vpop.f32.mrb[0].mxu0 }
  0xfa   : > { %v5074_v11 = vadd.f32 %v4169_v9, %v938_v10  ;;  %v4384_v12 = vpop.f32.mrb[1].mxu0 }
  0xfc   : > { %1108 = vrot.lane.b32.xlu1 %v5074_v11, %s5730_s0  ;;  %943 = vrot.lane.b32.xlu0 %v5074_v11, %s5740_s11  ;;  %s5775_s11 = sld [smem:[#allocation9_spill]]  ;;  %s5776_s0 = sld [smem:[#allocation12_spill]] }
 0x100   : > { %1276 = vrot.lane.b32.xlu1 %v5074_v11, %s5738_s29  ;;  %1110 = vrot.lane.b32.xlu0 %v5074_v11, %s5742_s2  ;;  %s5783_s29 = smov 96   ;;  %s5789_s2 = smov 56  }
 0x104   : > { %1442 = vrot.lane.b32.xlu1 %v5074_v11, %s5728_s12  ;;  %1274 = vrot.lane.b32.xlu0 %v5074_v11, %s5726_s1  ;;  %s5736_s1 = smov 8   ;;  %s5777_s12 = sld [smem:[#allocation11_spill]] }
 0x108   : > { %1440 = vrot.lane.b32.xlu0 %v5074_v11, %s5724_s4  ;;  %s5734_s4 = smov 16  }
 0x16e   : > { %v1109_v13 = vpop.permute.xlu1 %1108  ;;  %v944_v14 = vpop.permute.xlu0 %943 }
 0x16f   : > { %4386 = vmatpush3.xpose.msk.msra.mxu1 %vm945_vm2, %v944_v14 }
 0x170   : > { %4390 = vmatprep.subr.mxu1 %v4869_v6 }
 0x172   : > { %4388 = vmatmul.mubr.msk.f32.vlgmr.msra.gmra.mrb[0].mxu1 %vm945_vm2, %v5074_v11  ;;  %v1111_v15 = vpop.permute.xlu0 %1110  ;;  %v1277_v16 = vpop.permute.xlu1 %1276 }
 0x173   : > { %4396 = vmatpush3.xpose.msk.msra.mxu0 %vm945_vm2, %v1111_v15  ;;  %4392 = vmatprep.mubr.msk.f32.mxu1 %vm4868_vm0, %v4869_v6 }
 0x174   : > { %4405 = vmatprep.subr.mxu0 %v4869_v6 }
 0x176   : > { %4398 = vmatmul.mubr.msk.f32.vlgmr.msra.gmra.mrb[2].mxu0 %vm945_vm2, %v1109_v13  ;;  %v1275_v17 = vpop.permute.xlu0 %1274  ;;  %v1443_v18 = vpop.permute.xlu1 %1442 }
 0x177   : > { %4406 = vmatpush3.xpose.msk.msra.mxu0 %vm945_vm2, %v1277_v16  ;;  %4407 = vmatprep.mubr.msk.f32.mxu0 %vm4868_vm0, %v4869_v6 }
 0x178   : > { %4415 = vmatprep.subr.mxu0 %v4869_v6 }
 0x17a   : > { %4408 = vmatmul.mubr.msk.f32.vlgmr.msra.gmra.mrb[4].mxu0 %vm945_vm2, %v1275_v17  ;;  %v1441_v19 = vpop.permute.xlu0 %1440 }
 0x17b   : > { %4416 = vmatpush3.xpose.msk.msra.mxu0 %vm945_vm2, %v1443_v18  ;;  %4417 = vmatprep.mubr.msk.f32.mxu0 %vm4868_vm0, %v4869_v6 }
 0x17c   : > { %4672 = vmatprep.subr.bf16.mxu0 %v4867_v3 }
 0x17e   : > { %4418 = vmatmul.mubr.msk.f32.vlgmr.msra.gmra.mrb[6].mxu0 %vm945_vm2, %v1441_v19 }
 0x17f   : > { %4433 = vmatprep.mubr.msk.f32.mxu0 %vm4868_vm0, %v4869_v6 }
 0x245   : > { %v1016_v20 = vpop.f32.mrb[0].mxu1 }
 0x246   : > { %v1020_v21 = vmul.f32 0.35355338, %v1016_v20  ;;  %v4389_v22 = vpop.f32.mrb[1].mxu1 }
 0x248   : > { %v1021_v23 = vsel %vm945_vm2, %v1020_v21, -inf }
 0x249   : > { %1022 = vmax.xlane.f32.xlu1 %v1021_v23  ;;  %v1182_v24 = vpop.f32.mrb[2].mxu0 }
 0x24a   : > { %v1186_v25 = vmul.f32 0.35355338, %v1182_v24  ;;  %v4399_v26 = vpop.f32.mrb[3].mxu0 }
 0x24c   : > { %v1187_v27 = vsel %vm945_vm2, %v1186_v25, -inf }
 0x24d   : > { %1188 = vmax.xlane.f32.xlu0 %v1187_v27  ;;  %v1348_v28 = vpop.f32.mrb[4].mxu0 }
 0x24e   : > { %v1352_v29 = vmul.f32 0.35355338, %v1348_v28  ;;  %v4409_v30 = vpop.f32.mrb[5].mxu0 }
 0x250   : > { %v1353_v31 = vsel %vm945_vm2, %v1352_v29, -inf }
 0x251   : > { %1354 = vmax.xlane.f32.xlu0 %v1353_v31  ;;  %v1514_v32 = vpop.f32.mrb[6].mxu0 }
 0x252   : > { %v1518_v33 = vmul.f32 0.35355338, %v1514_v32  ;;  %v4419_v34 = vpop.f32.mrb[7].mxu0 }
 0x254   : > { %v1519_v35 = vsel %vm945_vm2, %v1518_v33, -inf }
 0x255   : > { %1520 = vmax.xlane.f32.xlu1 %v1519_v35 }
 0x266   : > { %1198 = vrot.lane.b32.xlu1 %v5074_v11, %s5723_s9  ;;  %s5732_s9 = smov 24  }
 0x2d6   : > { %v1023_v36 = vpop.xlane.xlu1 %1022 }
 0x2d7   : > { %v1024_v37 = vsub.f32 %v1020_v21, %v1023_v36 }
 0x2d9   : > { %v1025_v38 = vmul.f32 1.442695, %v1024_v37 }
 0x2da   : > { %v1189_v39 = vpop.xlane.xlu0 %1188 }
 0x2db   : > { %4801 = vpow2.f32 %v1025_v38  ;;  %v1190_v40 = vsub.f32 %v1186_v25, %v1189_v39 }
 0x2dd   : > { %v1191_v41 = vmul.f32 1.442695, %v1190_v40 }
 0x2de   : > { %v1355_v51 = vpop.xlane.xlu0 %1354 }
 0x2df   : > { %4803 = vpow2.f32 %v1191_v41  ;;  %v1356_v52 = vsub.f32 %v1352_v29, %v1355_v51 }
 0x2e1   : > { %v1357_v53 = vmul.f32 1.442695, %v1356_v52 }
 0x2e2   : > { %v1521_v42 = vpop.xlane.xlu1 %1520 }
 0x2e3   : > { %v1522_v43 = vsub.f32 %v1518_v33, %v1521_v42 }
 0x2e5   : > { %v4802_v44 = vpop.eup %4801  ;;  %v1523_v45 = vmul.f32 1.442695, %v1522_v43 }
 0x2e6   : > { %v1027_v46 = vsel %vm945_vm2, %v4802_v44, 0.0  ;;  %v1199_v56 = vpop.permute.xlu1 %1198 }
 0x2e7   : > { %4805 = vpow2.f32 %v1523_v45  ;;  %1028 = vadd.xlane.f32.xlu0 %v1027_v46 }
 0x2e8   : > { %4807 = vpow2.f32 %v1357_v53  ;;  %v5193_v53 = vld [vmem:[%s5775_s11] sm:$0xf]  ;;  %s5782_s11 = smov 88  }
 0x2e9   : > { %v4804_v47 = vpop.eup %4803 }
 0x2ea   : > { %v1193_v48 = vsel %vm945_vm2, %v4804_v47, 0.0 }
 0x2eb   : > { %1194 = vadd.xlane.f32.xlu1 %v1193_v48 }
 0x2f1   : > { %v4806_v49 = vpop.eup %4805 }
 0x2f2   : > { %v1525_v50 = vsel %vm945_vm2, %v4806_v49, 0.0  ;;  %v4808_v54 = vpop.eup %4807 }
 0x2f3   : > { %1526 = vadd.xlane.f32.xlu1 %v1525_v50  ;;  %v1359_v55 = vsel %vm945_vm2, %v4808_v54, 0.0 }
 0x2fd   : > { %1032 = vrot.lane.b32.xlu0 %v5074_v11, %s5722_s30  ;;  %s5772_s30 = sld [smem:[#allocation7_spill]] }
 0x303   : > { %v1624_v12 = vld [vmem:[%s5772_s30 + $0x8] sm:$0xff]  ;;  %v1625_v18 = vld [vmem:[%s5772_s30 + $0x10] sm:$0xff]  ;;  %v1626_v19 = vld [vmem:[%s5772_s30 + $0x18] sm:$0xff] }
 0x304   : > { %1364 = vrot.lane.b32.xlu1 %v5074_v11, %s5721_s6  ;;  %v4676_v20 = vpack.c.bf16 %v1626_v19, %v1625_v18  ;;  %s5773_s6 = sld [smem:[#allocation8_spill]] }
 0x30a   : > { %v4183_v31 = vld [vmem:[%s5773_s6] ss:$0 sm:$0xff] }
 0x31c   : > { %1360 = vadd.xlane.f32.xlu0 %v1359_v55 }
 0x332   : > { %1530 = vrot.lane.b32.xlu0 %v5074_v11, %s5720_s10  ;;  %v1623_v11 = vld [vmem:[%s5772_s30] sm:$0xff]  ;;  %s5786_s10 = smov 72  }
 0x333   : > { %v4673_v13 = vpack.c.bf16 %v1624_v12, %v1623_v11  ;;  %v4185_v12 = vld [vmem:[%s5777_s12] ss:$0 sm:$0xff]  ;;  %s5780_s12 = sld [smem:[#allocation4_spill]] }
 0x335   : > { %4674 = vmatpush3.bf16.msra.mxu0 %v4673_v13  ;;  %v1933_v13 = vld [vmem:[%s5778_s3] sm:$0xff] }
 0x336   : > { %4675 = vmatprep.subr.bf16.mxu0 %v4867_v3 }
 0x339   : > { %4677 = vmatpush3.bf16.msra.mxu0 %v4676_v20  ;;  %v1935_v20 = vld [vmem:[%s5778_s3 + $0x10] sm:$0xff]  ;;  %s852_s6 = scalar_lea.vmem %s5780_s12, %s5779_s7  ;;  %s5784_s7 = smov 80  }
 0x33a   : > { %4678 = vmatprep.subr.bf16.mxu0 %v4867_v3  ;;  %s5787_s12 = smov 112  }
 0x374   : > { %v1029_v57 = vpop.xlane.xlu0 %1028 }
 0x375   : > { %4809 = vrcp.f32 %v1029_v57 }
 0x378   : > { %v1033_v58 = vpop.permute.xlu0 %1032  ;;  %v1195_v59 = vpop.xlane.xlu1 %1194 }
 0x379   : > { %4811 = vrcp.f32 %v1195_v59  ;;  %4391 = vmatpush3.msra.mxu1 %v1033_v58  ;;  %v1738_v59 = vld [vmem:[%s5776_s0] sm:$0xff] }
 0x37a   : > { %4400 = vmatprep.subr.mxu1 %v4869_v6 }
 0x37f   : > { %v4810_v60 = vpop.eup %4809 }
 0x380   : > { %v1031_v61 = vmul.f32 %v4810_v60, %v4802_v44  ;;  %v1527_v62 = vpop.xlane.xlu1 %1526  ;;  %v1739_v60 = vld [vmem:[%s5776_s0 + $0x8] sm:$0xff] }
 0x382   : > { %4393 = vmatmul.mubr.msk.f32.vlgmr.msra.gmra.mrb[2].mxu1 %vm945_vm2, %v1031_v61 }
 0x383   : > { %v4812_v63 = vpop.eup %4811  ;;  %4401 = vmatpush3.msra.mxu1 %v1199_v56  ;;  %4402 = vmatprep.mubr.msk.f32.mxu1 %vm4868_vm0, %v4869_v6 }
 0x384   : > { %v1197_v0 = vmul.f32 %v4812_v63, %v4804_v47  ;;  %v1365_v1 = vpop.permute.xlu1 %1364  ;;  %4410 = vmatprep.subr.mxu1 %v4869_v6 }
 0x386   : > { %4403 = vmatmul.mubr.msk.f32.vlgmr.msra.gmra.mrb[4].mxu1 %vm945_vm2, %v1197_v0  ;;  %v1740_v0 = vld [vmem:[%s5776_s0 + $0x10] sm:$0xff] }
 0x387   : > { %4411 = vmatpush3.msra.mxu1 %v1365_v1  ;;  %4412 = vmatprep.mubr.msk.f32.mxu1 %vm4868_vm0, %v4869_v6  ;;  %v1741_v1 = vld [vmem:[%s5776_s0 + $0x18] sm:$0xff] }
 0x388   : > { %4420 = vmatprep.subr.mxu1 %v4869_v6 }
 0x3a9   : > { %v1361_v2 = vpop.xlane.xlu0 %1360 }
 0x3aa   : > { %4813 = vrcp.f32 %v1361_v2  ;;  %v4688_v2 = vpack.c.bf16 %v1741_v1, %v1740_v0 }
 0x3ab   : > { %4815 = vrcp.f32 %v1527_v62  ;;  %v4685_v62 = vpack.c.bf16 %v1739_v60, %v1738_v59 }
 0x3ad   : > { %v1531_v9 = vpop.permute.xlu0 %1530 }
 0x3b4   : > { %v4814_v4 = vpop.eup %4813 }
 0x3b5   : > { %v1363_v5 = vmul.f32 %v4814_v4, %v4808_v54  ;;  %v4816_v7 = vpop.eup %4815  ;;  %v1742_v4 = vld [vmem:[%s5776_s0 + $0x20] sm:$0xff] }
 0x3b6   : > { %v1529_v10 = vmul.f32 %v4816_v7, %v4806_v49  ;;  %v1723_v49 = vlaneseq }
 0x3b7   : > { %4413 = vmatmul.mubr.msk.f32.vlgmr.msra.gmra.mrb[6].mxu1 %vm945_vm2, %v1363_v5  ;;  %v1743_v5 = vld [vmem:[%s5776_s0 + $0x28] sm:$0xff] }
 0x3b8   : > { %4421 = vmatpush3.msra.mxu1 %v1531_v9  ;;  %4422 = vmatprep.mubr.msk.f32.mxu1 %vm4868_vm0, %v4869_v6  ;;  %v5187_v51 = vshrl.u32 %v1723_v49, 7  ;;  %v4691_v7 = vpack.c.bf16 %v1743_v5, %v1742_v4  ;;  %v1744_v9 = vld [vmem:[%s5776_s0 + $0x30] sm:$0xff] }
 0x3b9   : > { %4477 = vmatprep.subr.mxu1 %v4869_v6 }
 0x3ba   : > { %v1725_v52 = vsub.s32 0, %v5187_v51  ;;  %v1730_v54 = vsub.s32 1, %v5187_v51 }
 0x3bb   : > { %4423 = vmatmul.mubr.msk.f32.vlgmr.msra.gmra.mrb[8].mxu1 %vm945_vm2, %v1529_v10  ;;  %v1745_v10 = vld [vmem:[%s5776_s0 + $0x38] sm:$0xff]  ;;  %s5795_s0 = smov 16  }
 0x3bc   : > { %4479 = vmatprep.mubr.msk.f32.mxu1 %vm4868_vm0, %v4869_v6  ;;  %v1726_v55 = vrot.slane %v5193_v53, %v1725_v52  ;;  %v1731_v58 = vrot.slane %v5193_v53, %v1730_v54  ;;  %v4694_v11 = vpack.c.bf16 %v1745_v10, %v1744_v9 }
 0x455   : > { %v1104_v14 = vpop.f32.mrb[2].mxu1 }
 0x456   : > { %v4394_v15 = vpop.f32.mrb[3].mxu1 }
 0x459   : > { %v1270_v16 = vpop.f32.mrb[4].mxu1 }
 0x45a   : > { %1607 = vrot.lane.b32.xlu1 %v1270_v16, %s5736_s1  ;;  %v4404_v17 = vpop.f32.mrb[5].mxu1  ;;  %s5790_s1 = smov 64  }
 0x48a   : > { %v1436_v21 = vpop.f32.mrb[6].mxu1 }
 0x48b   : > { %1611 = vrot.lane.b32.xlu0 %v1436_v21, %s5734_s4  ;;  %v4414_v22 = vpop.f32.mrb[7].mxu1  ;;  %s5774_s4 = sld [smem:[#allocation10_spill]]  ;;  %v1936_v21 = vld [vmem:[%s5778_s3 + $0x18] sm:$0xff] }
 0x48c   : > { %v4700_v22 = vpack.c.bf16 %v1936_v21, %v1935_v20 }
 0x48e   : > { %v1602_v23 = vpop.f32.mrb[8].mxu1 }
 0x48f   : > { %1615 = vrot.lane.b32.xlu1 %v1602_v23, %s5732_s9  ;;  %v4424_v24 = vpop.f32.mrb[9].mxu1  ;;  %v5260_v23 = vld [vmem:[%s852_s6] sm:$0xff]  ;;  %s5781_s9 = sld [smem:[#allocation15_spill]]  ;;  %s5788_s6 = smov 104  }
 0x491   : > { %v1733_v42 = vld [vmem:[%s5774_s4] sm:$0xff]  ;;  %v1734_v43 = vld [vmem:[%s5774_s4 + $0x8] sm:$0xff]  ;;  %v1736_v45 = vld [vmem:[%s5774_s4 + $0x18] sm:$0xff] }
 0x492   : > { %v4679_v44 = vpack.c.bf16 %v1734_v43, %v1733_v42 }
 0x4cc   : > { %v1608_v25 = vpop.permute.xlu1 %1607 }
 0x4cd   : > { %v1618_v27 = vsel %vm945_vm2, %v1104_v14, %v1608_v25  ;;  %v1934_v14 = vld [vmem:[%s5778_s3 + $0x8] sm:$0xff]  ;;  %s5794_s3 = smov 8  }
 0x4ce   : > { %v4697_v18 = vpack.c.bf16 %v1934_v14, %v1933_v13 }
 0x4fd   : > { %v1612_v26 = vpop.permute.xlu0 %1611 }
 0x4fe   : > { %v1620_v28 = vsel %vm1619_vm3, %v1618_v27, %v1612_v26  ;;  %v4189_v26 = vld [vmem:[%s5781_s9] ss:$0 sm:$0xff]  ;;  %s5791_s9 = smov 48  }
 0x501   : > { %v1616_v29 = vpop.permute.xlu1 %1615 }
 0x502   : > { %v1622_v30 = vsel %vm1621_vm4, %v1620_v28, %v1616_v29 }
 0x503   : > { %4434 = vmatmul.mubr.msk.f32.vlgmr.msra.gmra.mrb[8].mxu0 %vm868_vm1, %v1622_v30 }
 0x504   : > { %4444 = vmatprep.mubr.msk.f32.mxu0 %vm4868_vm0, %v4869_v6  ;;  %4680 = vmatpush3.bf16.msra.mxu0 %v4679_v44 }
 0x505   : > { %4681 = vmatprep.subr.bf16.mxu0 %v4867_v3 }
 0x5d6   : > { %v1703_v32 = vpop.f32.mrb[8].mxu0 }
 0x5d7   : > { %v1704_v33 = vadd.f32 %v4183_v31, %v1703_v32  ;;  %v4435_v34 = vpop.f32.mrb[9].mxu0 }
 0x5d9   : > { %v1708_v35 = vadd.f32 %v1704_v33, %v5064_v8  ;;  %v1735_v8 = vld [vmem:[%s5774_s4 + $0x10] sm:$0xff]  ;;  %s5785_s4 = smov 120  }
 0x5da   : > { %v4682_v46 = vpack.c.bf16 %v1736_v45, %v1735_v8 }
 0x5db   : > { %v1709_v36 = vsel %vm868_vm1, %v1708_v35, 0.0 }
 0x5dc   : > { %1710 = vadd.xlane.f32.xlu0 %v1709_v36  ;;  %4683 = vmatpush3.bf16.msra.mxu0 %v4682_v46 }
 0x5dd   : > { %4684 = vmatprep.subr.bf16.mxu0 %v4867_v3 }
 0x669   : > { %v1711_v37 = vpop.xlane.xlu0 %1710 }
 0x66a   : > { %v1713_v38 = vmul.f32 0.03125, %v1711_v37  ;;  %v2020_v37 = vand.u32 127, %v1723_v49 }
 0x66c   : > { %v1714_v39 = vsub.f32 %v1708_v35, %v1713_v38  ;;  %vm2021_vm6 = vcmp.gt.s32.totalorder %v2020_v37, %v5187_v51 }
 0x66e   : > { %v1715_v40 = vmul.f32 %v1714_v39, %v1714_v39 }
 0x670   : > { %v1716_v41 = vsel %vm868_vm1, %v1715_v40, 0.0 }
 0x671   : > { %1717 = vadd.xlane.f32.xlu1 %v1716_v41 }
 0x6fe   : > { %v1718_v47 = vpop.xlane.xlu1 %1717 }
 0x6ff   : > { %v1719_v48 = vmul.f32 0.03125, %v1718_v47 }
 0x701   : > { %v1720_v50 = vadd.f32 1e-05, %v1719_v48 }
 0x703   : > { %4817 = vrsqrt.f32 %v1720_v50 }
 0x70d   : > { %v4818_v56 = vpop.eup %4817 }
 0x70e   : > { %v1722_v57 = vmul.f32 %v4818_v56, %v1714_v39  ;;  %v2022_v39 = vsel %vm2021_vm6, -1e+09, %v4869_v6 }
 0x710   : > { %v1727_v61 = vmul.f32 %v1726_v55, %v1722_v57 }
 0x712   : > { %v5208_v63 = vadd.f32 %v1731_v58, %v1727_v61 }
 0x714   : > { %4445 = vmatmul.mubr.msk.f32.vlgmr.msra.gmra.mrb[10].mxu0 %vm868_vm1, %v5208_v63 }
 0x715   : > { %4686 = vmatpush3.bf16.msra.mxu0 %v4685_v62  ;;  %4463 = vmatprep.mubr.msk.f32.mxu0 %vm4868_vm0, %v4869_v6 }
 0x716   : > { %4687 = vmatprep.subr.bf16.mxu0 %v4867_v3 }
 0x719   : > { %4689 = vmatpush3.bf16.msra.mxu0 %v4688_v2 }
 0x71a   : > { %4690 = vmatprep.subr.bf16.mxu0 %v4867_v3 }
 0x71d   : > { %4692 = vmatpush3.bf16.msra.mxu0 %v4691_v7 }
 0x71e   : > { %4693 = vmatprep.subr.bf16.mxu0 %v4867_v3 }
 0x721   : > { %4695 = vmatpush3.bf16.msra.mxu0 %v4694_v11 }
 0x722   : > { %4696 = vmatprep.subr.bf16.mxu0 %v4867_v3 }
 0x7e7   : > { %v1822_v15 = vpop.f32.mrb[10].mxu0 }
 0x7e8   : > { %v1823_v16 = vadd.f32 %v4185_v12, %v1822_v15  ;;  %v4446_v17 = vpop.f32.mrb[11].mxu0 }
 0x7ea   : > { %v1826_v19 = vmax.f32 %v1823_v16, 0.0 }
 0x7ec   : > { %4464 = vmatmul.mubr.msk.f32.vlgmr.msra.gmra.mrb[12].mxu0 %vm1833_vm5, %v1826_v19 }
 0x7ed   : > { %4698 = vmatpush3.bf16.msra.mxu0 %v4697_v18  ;;  %4474 = vmatprep.mubr.msk.f32.mxu0 %vm4868_vm0, %v4869_v6 }
 0x7ee   : > { %4699 = vmatprep.subr.bf16.mxu0 %v4867_v3 }
 0x7f1   : > { %4701 = vmatpush3.bf16.msra.mxu0 %v4700_v22 }
 0x7f2   : > { %4487 = vmatprep.subr.mxu0 %v4869_v6 }
 0x7f4   : > { %4475 = vmatmul.mubr.msk.f32.vlgmr.msra.gmra.mrb[14].mxu0 %vm868_vm1, %v5260_v23 }
 0x7f5   : > { %4489 = vmatprep.mubr.msk.f32.mxu0 %vm4868_vm0, %v4869_v6 }
 0x8bf   : > { %v5267_v24 = vpop.f32.mrb[12].mxu0 }
 0x8c0   : > { %v4465_v25 = vpop.f32.mrb[13].mxu0 }
 0x8c7   : > { %v2013_v27 = vpop.f32.mrb[14].mxu0 }
 0x8c8   : > { %v5272_v28 = vadd.f32 %v4189_v26, %v2013_v27  ;;  %v4476_v29 = vpop.f32.mrb[15].mxu0 }
 0x8ca   : > { %2191 = vrot.lane.b32.xlu1 %v5272_v28, %s5782_s11  ;;  %2024 = vrot.lane.b32.xlu0 %v5272_v28, %s5783_s29 }
 0x8ce   : > { %2358 = vrot.lane.b32.xlu1 %v5272_v28, %s5784_s7  ;;  %2189 = vrot.lane.b32.xlu0 %v5272_v28, %s5785_s4 }
 0x8d2   : > { %2525 = vrot.lane.b32.xlu1 %v5272_v28, %s5786_s10  ;;  %2356 = vrot.lane.b32.xlu0 %v5272_v28, %s5787_s12 }
 0x8d6   : > { %2523 = vrot.lane.b32.xlu0 %v5272_v28, %s5788_s6 }
 0x93c   : > { %v2192_v30 = vpop.permute.xlu1 %2191  ;;  %v2025_v31 = vpop.permute.xlu0 %2024 }
 0x93d   : > { %4478 = vmatpush3.xpose.msk.msra.mxu1 %vm945_vm2, %v2025_v31  ;;  %4488 = vmatpush3.xpose.msk.msra.mxu0 %vm945_vm2, %v2192_v30 }
 0x93e   : > { %4497 = vmatprep.subr.mxu0 %v4869_v6  ;;  %4482 = vmatprep.subr.mxu1 %v4869_v6 }
 0x940   : > { %v2359_v32 = vpop.permute.xlu1 %2358  ;;  %4480 = vmatmul.mubr.msk.f32.vlgmr.msra.gmra.mrb[10].mxu1 %vm945_vm2, %v5272_v28  ;;  %v2190_v33 = vpop.permute.xlu0 %2189 }
 0x941   : > { %4490 = vmatmul.mubr.msk.f32.vlgmr.msra.gmra.mrb[16].mxu0 %vm945_vm2, %v2190_v33  ;;  %4484 = vmatprep.mubr.msk.f32.mxu1 %vm4868_vm0, %v4869_v6 }
 0x942   : > { %4498 = vmatpush3.xpose.msk.msra.mxu0 %vm945_vm2, %v2359_v32  ;;  %4499 = vmatprep.mubr.msk.f32.mxu0 %vm4868_vm0, %v4869_v6 }
 0x943   : > { %4507 = vmatprep.subr.mxu0 %v4869_v6 }
 0x944   : > { %v2526_v34 = vpop.permute.xlu1 %2525  ;;  %v2357_v35 = vpop.permute.xlu0 %2356 }
 0x945   : > { %4500 = vmatmul.mubr.msk.f32.vlgmr.msra.gmra.mrb[18].mxu0 %vm945_vm2, %v2357_v35 }
 0x946   : > { %4508 = vmatpush3.xpose.msk.msra.mxu0 %vm945_vm2, %v2526_v34  ;;  %4509 = vmatprep.mubr.msk.f32.mxu0 %vm4868_vm0, %v4869_v6 }
 0x947   : > { %4702 = vmatprep.subr.bf16.mxu0 %v4867_v3 }
 0x948   : > { %v2524_v36 = vpop.permute.xlu0 %2523 }
 0x949   : > { %4510 = vmatmul.mubr.msk.f32.vlgmr.msra.gmra.mrb[20].mxu0 %vm945_vm2, %v2524_v36 }
 0x94a   : > { %4525 = vmatprep.mubr.msk.f32.mxu0 %vm4868_vm0, %v4869_v6 }
 0xa13   : > { %v2096_v38 = vpop.f32.mrb[10].mxu1 }
 0xa14   : > { %v2100_v40 = vmul.f32 0.35355338, %v2096_v38  ;;  %v4481_v41 = vpop.f32.mrb[11].mxu1  ;;  %v2263_v42 = vpop.f32.mrb[16].mxu0 }
 0xa15   : > { %v2267_v43 = vmul.f32 0.35355338, %v2263_v42  ;;  %v4491_v44 = vpop.f32.mrb[17].mxu0  ;;  %v2706_v41 = vld [vmem:[%s5793_s13 + $0x8] sm:$0xff] }
 0xa16   : > { %v2101_v8 = vadd.f32 %v2100_v40, %v2022_v39  ;;  %v2705_v40 = vld [vmem:[%s5793_s13] sm:$0xff] }
 0xa17   : > { %v2268_v45 = vadd.f32 %v2267_v43, %v2022_v39  ;;  %v4703_v42 = vpack.c.bf16 %v2706_v41, %v2705_v40  ;;  %v2898_v40 = vld [vmem:[%s5703_s17 + $0x8] sm:$0xff]  ;;  %v1923_v41 = vsub.s32 2, %v5187_v51 }
 0xa18   : > { %v2430_v46 = vpop.f32.mrb[18].mxu0  ;;  %v2102_v47 = vsel %vm945_vm2, %v2101_v8, -inf }
 0xa19   : > { %v2434_v48 = vmul.f32 0.35355338, %v2430_v46  ;;  %2103 = vmax.xlane.f32.xlu1 %v2102_v47  ;;  %v4501_v50 = vpop.f32.mrb[19].mxu0  ;;  %v2269_v49 = vsel %vm945_vm2, %v2268_v45, -inf  ;;  %4704 = vmatpush3.bf16.msra.mxu0 %v4703_v42  ;;  %v2707_v46 = vld [vmem:[%s5793_s13 + $0x10] sm:$0xff]  ;;  %v2708_v47 = vld [vmem:[%s5793_s13 + $0x18] sm:$0xff] }
 0xa1a   : > { %2270 = vmax.xlane.f32.xlu0 %v2269_v49  ;;  %4705 = vmatprep.subr.bf16.mxu0 %v4867_v3 }
 0xa1b   : > { %v2435_v55 = vadd.f32 %v2434_v48, %v2022_v39  ;;  %v4706_v48 = vpack.c.bf16 %v2708_v47, %v2707_v46  ;;  %v1924_v46 = vrot.slane %v5193_v53, %v1923_v41  ;;  %v1928_v47 = vsub.s32 3, %v5187_v51 }
 0xa1c   : > { %v2597_v56 = vpop.f32.mrb[20].mxu0 }
 0xa1d   : > { %v2601_v57 = vmul.f32 0.35355338, %v2597_v56  ;;  %v4511_v58 = vpop.f32.mrb[21].mxu0  ;;  %v2436_v59 = vsel %vm945_vm2, %v2435_v55, -inf  ;;  %4707 = vmatpush3.bf16.msra.mxu0 %v4706_v48 }
 0xa1e   : > { %2437 = vmax.xlane.f32.xlu0 %v2436_v59  ;;  %4708 = vmatprep.subr.bf16.mxu0 %v4867_v3 }
 0xa1f   : > { %v2602_v60 = vadd.f32 %v2601_v57, %v2022_v39  ;;  %v4187_v57 = vld [vmem:[%s5797_s8] ss:$0 sm:$0xff] }
 0xa20   : > { %v1904_v58 = vadd.f32 %v4187_v57, %v5267_v24 }
 0xa21   : > { %v2603_v61 = vsel %vm945_vm2, %v2602_v60, -inf }
 0xa22   : > { %2604 = vmax.xlane.f32.xlu1 %v2603_v61  ;;  %v1907_v59 = vadd.f32 %v1904_v58, %v5208_v63  ;;  %v4203_v63 = vld [vmem:[%s5798_s14] ss:$0 sm:$0xff] }
 0xa33   : > { %2280 = vrot.lane.b32.xlu1 %v5272_v28, %s5789_s2  ;;  %s5792_s2 = smov 40  }
 0xaa6   : > { %v2104_v62 = vpop.xlane.xlu1 %2103 }
 0xaa7   : > { %v2105_v0 = vsub.f32 %v2101_v8, %v2104_v62  ;;  %v2271_v1 = vpop.xlane.xlu0 %2270 }
 0xaa8   : > { %v2272_v2 = vsub.f32 %v2268_v45, %v2271_v1 }
 0xaa9   : > { %v2106_v4 = vmul.f32 1.442695, %v2105_v0 }
 0xaaa   : > { %v2273_v5 = vmul.f32 1.442695, %v2272_v2 }
 0xaab   : > { %4819 = vpow2.f32 %v2106_v4  ;;  %v2438_v17 = vpop.xlane.xlu0 %2437 }
 0xaac   : > { %4821 = vpow2.f32 %v2273_v5  ;;  %v2439_v18 = vsub.f32 %v2435_v55, %v2438_v17 }
 0xaae   : > { %v2440_v19 = vmul.f32 1.442695, %v2439_v18 }
 0xaaf   : > { %v2605_v7 = vpop.xlane.xlu1 %2604 }
 0xab0   : > { %v2606_v9 = vsub.f32 %v2602_v60, %v2605_v7  ;;  %v1908_v60 = vsel %vm868_vm1, %v1907_v59, 0.0 }
 0xab2   : > { %v2607_v10 = vmul.f32 1.442695, %v2606_v9 }
 0xab3   : > { %v2281_v22 = vpop.permute.xlu1 %2280 }
 0xab4   : > { %4823 = vpow2.f32 %v2607_v10 }
 0xab5   : > { %v4820_v11 = vpop.eup %4819  ;;  %4825 = vpow2.f32 %v2440_v19 }
 0xab6   : > { %v4822_v12 = vpop.eup %4821  ;;  %v2108_v13 = vsel %vm945_vm2, %v4820_v11, 0.0 }
 0xab7   : > { %2109 = vadd.xlane.f32.xlu0 %v2108_v13  ;;  %v2275_v14 = vsel %vm945_vm2, %v4822_v12, 0.0 }
 0xab8   : > { %2276 = vadd.xlane.f32.xlu1 %v2275_v14 }
 0xabe   : > { %v4824_v15 = vpop.eup %4823 }
 0xabf   : > { %v2609_v16 = vsel %vm945_vm2, %v4824_v15, 0.0  ;;  %v4826_v20 = vpop.eup %4825 }
 0xac0   : > { %2610 = vadd.xlane.f32.xlu1 %v2609_v16  ;;  %v2442_v21 = vsel %vm945_vm2, %v4826_v20, 0.0 }
 0xacd   : > { %2113 = vrot.lane.b32.xlu0 %v5272_v28, %s5790_s1 }
 0xad1   : > { %2447 = vrot.lane.b32.xlu1 %v5272_v28, %s5791_s9 }
 0xaec   : > { %2443 = vadd.xlane.f32.xlu0 %v2442_v21  ;;  %v2814_v21 = vld [vmem:[%s5701_s15 + $0x8] sm:$0xff] }
 0xb02   : > { %2614 = vrot.lane.b32.xlu0 %v5272_v28, %s5792_s2  ;;  %s5796_s2 = smov 24  }
 0xb44   : > { %v2110_v25 = vpop.xlane.xlu0 %2109 }
 0xb45   : > { %4827 = vrcp.f32 %v2110_v25  ;;  %v2277_v26 = vpop.xlane.xlu1 %2276  ;;  %v2815_v25 = vld [vmem:[%s5701_s15 + $0x10] sm:$0xff] }
 0xb46   : > { %4829 = vrcp.f32 %v2277_v26  ;;  %v2816_v26 = vld [vmem:[%s5701_s15 + $0x18] sm:$0xff] }
 0xb48   : > { %v2114_v27 = vpop.permute.xlu0 %2113 }
 0xb49   : > { %4483 = vmatpush3.msra.mxu1 %v2114_v27  ;;  %v4712_v27 = vpack.c.bf16 %v2816_v26, %v2815_v25 }
 0xb4a   : > { %4492 = vmatprep.subr.mxu1 %v4869_v6 }
 0xb4d   : > { %v2611_v31 = vpop.xlane.xlu1 %2610 }
 0xb4f   : > { %v4828_v29 = vpop.eup %4827 }
 0xb50   : > { %v2112_v30 = vmul.f32 %v4828_v29, %v4820_v11  ;;  %v4830_v32 = vpop.eup %4829 }
 0xb51   : > { %v2279_v28 = vmul.f32 %v4830_v32, %v4822_v12  ;;  %v2448_v33 = vpop.permute.xlu1 %2447 }
 0xb52   : > { %4485 = vmatmul.mubr.msk.f32.vlgmr.msra.gmra.mrb[12].mxu1 %vm945_vm2, %v2112_v30 }
 0xb53   : > { %4493 = vmatpush3.msra.mxu1 %v2281_v22  ;;  %4494 = vmatprep.mubr.msk.f32.mxu1 %vm4868_vm0, %v4869_v6 }
 0xb54   : > { %4502 = vmatprep.subr.mxu1 %v4869_v6 }
 0xb56   : > { %4495 = vmatmul.mubr.msk.f32.vlgmr.msra.gmra.mrb[14].mxu1 %vm945_vm2, %v2279_v28 }
 0xb57   : > { %4503 = vmatpush3.msra.mxu1 %v2448_v33  ;;  %4504 = vmatprep.mubr.msk.f32.mxu1 %vm4868_vm0, %v4869_v6 }
 0xb58   : > { %4512 = vmatprep.subr.mxu1 %v4869_v6 }
 0xb79   : > { %v2444_v34 = vpop.xlane.xlu0 %2443 }
 0xb7a   : > { %4831 = vrcp.f32 %v2444_v34  ;;  %v5397_v34 = vld [vmem:[%s5711_s25] sm:$0x3f] }
 0xb7b   : > { %4833 = vrcp.f32 %v2611_v31 }
 0xb7d   : > { %v2615_v38 = vpop.permute.xlu0 %2614 }
 0xb84   : > { %v4832_v35 = vpop.eup %4831 }
 0xb85   : > { %v2446_v36 = vmul.f32 %v4832_v35, %v4826_v20  ;;  %v4834_v37 = vpop.eup %4833  ;;  %v2806_v35 = vrot.slane %v5397_v34, %v1725_v52 }
 0xb86   : > { %v2613_v39 = vmul.f32 %v4834_v37, %v4824_v15 }
 0xb87   : > { %4505 = vmatmul.mubr.msk.f32.vlgmr.msra.gmra.mrb[16].mxu1 %vm945_vm2, %v2446_v36 }
 0xb88   : > { %4513 = vmatpush3.msra.mxu1 %v2615_v38  ;;  %4514 = vmatprep.mubr.msk.f32.mxu1 %vm4868_vm0, %v4869_v6  ;;  %v2811_v38 = vrot.slane %v5397_v34, %v1730_v54  ;;  %v2899_v54 = vld [vmem:[%s5703_s17 + $0x10] sm:$0xff] }
 0xb89   : > { %4550 = vmatprep.subr.mxu1 %v4869_v6 }
 0xb8b   : > { %4515 = vmatmul.mubr.msk.f32.vlgmr.msra.gmra.mrb[18].mxu1 %vm945_vm2, %v2613_v39  ;;  %v2897_v39 = vld [vmem:[%s5703_s17] sm:$0xff] }
 0xb8c   : > { %4552 = vmatprep.mubr.msk.f32.mxu1 %vm4868_vm0, %v4869_v6 }
 0xc25   : > { %v2185_v43 = vpop.f32.mrb[12].mxu1 }
 0xc26   : > { %v4486_v44 = vpop.f32.mrb[13].mxu1 }
 0xc27   : > { %v4715_v44 = vpack.c.bf16 %v2898_v40, %v2897_v39 }
 0xc29   : > { %v2352_v8 = vpop.f32.mrb[14].mxu1 }
 0xc2a   : > { %2691 = vrot.lane.b32.xlu1 %v2352_v8, %s5794_s3  ;;  %v4496_v45 = vpop.f32.mrb[15].mxu1 }
 0xc2b   : > { %v2900_v45 = vld [vmem:[%s5703_s17 + $0x18] sm:$0xff] }
 0xc2c   : > { %v4718_v48 = vpack.c.bf16 %v2900_v45, %v2899_v54 }
 0xc5a   : > { %v2519_v50 = vpop.f32.mrb[16].mxu1 }
 0xc5b   : > { %2695 = vrot.lane.b32.xlu0 %v2519_v50, %s5795_s0  ;;  %v4506_v49 = vpop.f32.mrb[17].mxu1 }
 0xc5c   : > { %v1929_v49 = vrot.slane %v5193_v53, %v1928_v47  ;;  %v4207_v53 = vld [vmem:[%s5704_s18] ss:$0 sm:$0xff] }
 0xc5e   : > { %v2686_v55 = vpop.f32.mrb[18].mxu1 }
 0xc5f   : > { %2699 = vrot.lane.b32.xlu1 %v2686_v55, %s5796_s2  ;;  %v4516_v56 = vpop.f32.mrb[19].mxu1 }
 0xc60   : > { %v4205_v56 = vld [vmem:[%s5702_s16] ss:$0 sm:$0xff] }
 0xc83   : > { %1909 = vadd.xlane.f32.xlu1 %v1908_v60 }
 0xc9c   : > { %v2692_v61 = vpop.permute.xlu1 %2691 }
 0xc9d   : > { %v2702_v0 = vsel %vm945_vm2, %v2185_v43, %v2692_v61 }
 0xccd   : > { %v2696_v62 = vpop.permute.xlu0 %2695 }
 0xcce   : > { %v2703_v1 = vsel %vm1619_vm3, %v2702_v0, %v2696_v62 }
 0xcd1   : > { %v2700_v2 = vpop.permute.xlu1 %2699 }
 0xcd2   : > { %v2704_v4 = vsel %vm1621_vm4, %v2703_v1, %v2700_v2 }
 0xcd3   : > { %4526 = vmatmul.mubr.msk.f32.vlgmr.msra.gmra.mrb[22].mxu0 %vm868_vm1, %v2704_v4 }
 0xcd4   : > { %4536 = vmatprep.mubr.msk.f32.mxu0 %vm4868_vm0, %v4869_v6 }
 0xd10   : > { %v1910_v11 = vpop.xlane.xlu1 %1909 }
 0xd11   : > { %v1911_v12 = vmul.f32 0.03125, %v1910_v11 }
 0xd13   : > { %v1912_v15 = vsub.f32 %v1907_v59, %v1911_v12 }
 0xd15   : > { %v1913_v19 = vmul.f32 %v1912_v15, %v1912_v15 }
 0xd17   : > { %v1914_v20 = vsel %vm868_vm1, %v1913_v19, 0.0 }
 0xda6   : > { %v2785_v24 = vpop.f32.mrb[22].mxu0 }
 0xda7   : > { %v2786_v5 = vadd.f32 %v4203_v63, %v2785_v24  ;;  %v4527_v7 = vpop.f32.mrb[23].mxu0 }
 0xda9   : > { %v2789_v9 = vadd.f32 %v2786_v5, %v5260_v23  ;;  %v2813_v23 = vld [vmem:[%s5701_s15] sm:$0xff] }
 0xdaa   : > { %v4709_v22 = vpack.c.bf16 %v2814_v21, %v2813_v23 }
 0xdab   : > { %v2790_v10 = vsel %vm868_vm1, %v2789_v9, 0.0 }
 0xdac   : > { %2791 = vadd.xlane.f32.xlu0 %v2790_v10  ;;  %4710 = vmatpush3.bf16.msra.mxu0 %v4709_v22 }
 0xdad   : > { %4711 = vmatprep.subr.bf16.mxu0 %v4867_v3 }
 0xdb0   : > { %4713 = vmatpush3.bf16.msra.mxu0 %v4712_v27 }
 0xdb1   : > { %4714 = vmatprep.subr.bf16.mxu0 %v4867_v3 }
 0xe39   : > { %v2792_v13 = vpop.xlane.xlu0 %2791 }
 0xe3a   : > { %v2793_v14 = vmul.f32 0.03125, %v2792_v13 }
 0xe3c   : > { %v2794_v16 = vsub.f32 %v2789_v9, %v2793_v14 }
 0xe3e   : > { %v2795_v17 = vmul.f32 %v2794_v16, %v2794_v16 }
 0xe40   : > { %v2796_v18 = vsel %vm868_vm1, %v2795_v17, 0.0 }
 0xe41   : > { %2797 = vadd.xlane.f32.xlu0 %v2796_v18 }
 0xe45   : > { %1915 = vadd.xlane.f32.xlu0 %v1914_v20 }
 0xece   : > { %v2798_v29 = vpop.xlane.xlu0 %2797 }
 0xecf   : > { %v2799_v30 = vmul.f32 0.03125, %v2798_v29 }
 0xed1   : > { %v2800_v31 = vadd.f32 1e-05, %v2799_v30 }
 0xed2   : > { %v1916_v32 = vpop.xlane.xlu0 %1915 }
 0xed3   : > { %4835 = vrsqrt.f32 %v2800_v31  ;;  %v1917_v28 = vmul.f32 0.03125, %v1916_v32 }
 0xed5   : > { %v1918_v33 = vadd.f32 1e-05, %v1917_v28 }
 0xed7   : > { %4837 = vrsqrt.f32 %v1918_v33 }
 0xedd   : > { %v4836_v36 = vpop.eup %4835 }
 0xede   : > { %v2802_v37 = vmul.f32 %v4836_v36, %v2794_v16 }
 0xee0   : > { %v2807_v42 = vmul.f32 %v2806_v35, %v2802_v37 }
 0xee1   : > { %v4838_v43 = vpop.eup %4837 }
 0xee2   : > { %v1920_v52 = vmul.f32 %v4838_v43, %v1912_v15  ;;  %v5412_v8 = vadd.f32 %v2811_v38, %v2807_v42 }
 0xee4   : > { %4537 = vmatmul.mubr.msk.f32.vlgmr.msra.gmra.mrb[24].mxu0 %vm868_vm1, %v5412_v8  ;;  %v1925_v50 = vmul.f32 %v1924_v46, %v1920_v52 }
 0xee5   : > { %4716 = vmatpush3.bf16.msra.mxu0 %v4715_v44  ;;  %4547 = vmatprep.mubr.msk.f32.mxu0 %vm4868_vm0, %v4869_v6 }
 0xee6   : > { %4717 = vmatprep.subr.bf16.mxu0 %v4867_v3  ;;  %v1930_v55 = vadd.f32 %v1929_v49, %v1925_v50 }
 0xee9   : > { %4719 = vmatpush3.bf16.msra.mxu0 %v4718_v48 }
 0xeea   : > { %4560 = vmatprep.subr.mxu0 %v4869_v6 }
 0xeec   : > { %4548 = vmatmul.mubr.msk.f32.vlgmr.msra.gmra.mrb[26].mxu0 %vm868_vm1, %v1930_v55 }
 0xeed   : > { %4562 = vmatprep.mubr.msk.f32.mxu0 %vm4868_vm0, %v4869_v6 }
 0xfb7   : > { %v2893_v57 = vpop.f32.mrb[24].mxu0 }
 0xfb8   : > { %v2894_v58 = vadd.f32 %v4205_v56, %v2893_v57  ;;  %v4538_v59 = vpop.f32.mrb[25].mxu0 }
 0xfba   : > { %3145 = vrot.lane.b32.xlu0 %v2894_v58, %s5785_s4 }
 0xfbf   : > { %v2977_v60 = vpop.f32.mrb[26].mxu0 }
 0xfc0   : > { %v5443_v61 = vadd.f32 %v4207_v53, %v2977_v60  ;;  %v4549_v62 = vpop.f32.mrb[27].mxu0 }
 0xfc2   : > { %3479 = vrot.lane.b32.xlu0 %v5443_v61, %s5788_s6  ;;  %3147 = vrot.lane.b32.xlu1 %v5443_v61, %s5785_s4  ;;  %s5802_s4 = sld [smem:[#allocation19_spill]] }
 0xfc3   : > { %4551 = vmatpush3.xpose.msk.msra.mxu1 %vm945_vm2, %v5443_v61 }
 0xfc4   : > { %4555 = vmatprep.subr.mxu1 %v4869_v6 }
 0xfc6   : > { %4553 = vmatmul.mubr.msk.f32.vlgmr.msra.gmra.mrb[20].mxu1 %vm945_vm2, %v2894_v58  ;;  %3313 = vrot.lane.b32.xlu1 %v5443_v61, %s5787_s12 }
 0xfc7   : > { %4557 = vmatprep.mubr.msk.f32.mxu1 %vm4868_vm0, %v4869_v6 }
 0xfca   : > { %3311 = vrot.lane.b32.xlu1 %v2894_v58, %s5787_s12 }
 0xfce   : > { %3477 = vrot.lane.b32.xlu1 %v2894_v58, %s5788_s6 }
0x102c   : > { %v3146_v1 = vpop.permute.xlu0 %3145 }
0x1034   : > { %v3148_v0 = vpop.permute.xlu1 %3147  ;;  %v3480_v63 = vpop.permute.xlu0 %3479 }
0x1035   : > { %4561 = vmatpush3.xpose.msk.msra.mxu0 %vm945_vm2, %v3148_v0 }
0x1036   : > { %4570 = vmatprep.subr.mxu0 %v4869_v6 }
0x1038   : > { %4563 = vmatmul.mubr.msk.f32.vlgmr.msra.gmra.mrb[28].mxu0 %vm945_vm2, %v3146_v1  ;;  %v3314_v2 = vpop.permute.xlu1 %3313 }
0x1039   : > { %4571 = vmatpush3.xpose.msk.msra.mxu0 %vm945_vm2, %v3314_v2  ;;  %4572 = vmatprep.mubr.msk.f32.mxu0 %vm4868_vm0, %v4869_v6 }
0x103a   : > { %4580 = vmatprep.subr.mxu0 %v4869_v6 }
0x103c   : > { %v3312_v4 = vpop.permute.xlu1 %3311 }
0x103d   : > { %4573 = vmatmul.mubr.msk.f32.vlgmr.msra.gmra.mrb[30].mxu0 %vm945_vm2, %v3312_v4  ;;  %v3658_v4 = vld [vmem:[%s5705_s19] sm:$0xff] }
0x103e   : > { %4581 = vmatpush3.xpose.msk.msra.mxu0 %vm945_vm2, %v3480_v63  ;;  %4582 = vmatprep.mubr.msk.f32.mxu0 %vm4868_vm0, %v4869_v6  ;;  %v3659_v63 = vld [vmem:[%s5705_s19 + $0x8] sm:$0xff] }
0x103f   : > { %4720 = vmatprep.subr.bf16.mxu0 %v4867_v3 }
0x1040   : > { %v3478_v24 = vpop.permute.xlu1 %3477 }
0x1041   : > { %4583 = vmatmul.mubr.msk.f32.vlgmr.msra.gmra.mrb[32].mxu0 %vm945_vm2, %v3478_v24  ;;  %v4721_v24 = vpack.c.bf16 %v3659_v63, %v3658_v4 }
0x1042   : > { %4598 = vmatprep.mubr.msk.f32.mxu0 %vm4868_vm0, %v4869_v6 }
0x1043   : > { %4722 = vmatpush3.bf16.msra.mxu0 %v4721_v24 }
0x1044   : > { %4723 = vmatprep.subr.bf16.mxu0 %v4867_v3 }
0x1099   : > { %v3053_v5 = vpop.f32.mrb[20].mxu1 }
0x109a   : > { %v3057_v7 = vmul.f32 0.35355338, %v3053_v5  ;;  %v4554_v9 = vpop.f32.mrb[21].mxu1  ;;  %v3660_v5 = vld [vmem:[%s5705_s19 + $0x10] sm:$0xff] }
0x109c   : > { %v3058_v10 = vsel %vm945_vm2, %v3057_v7, -inf }
0x109d   : > { %3059 = vmax.xlane.f32.xlu0 %v3058_v10 }
0x110b   : > { %v3219_v11 = vpop.f32.mrb[28].mxu0 }
0x110c   : > { %v3223_v12 = vmul.f32 0.35355338, %v3219_v11  ;;  %v4564_v13 = vpop.f32.mrb[29].mxu0 }
0x110e   : > { %v3224_v14 = vsel %vm945_vm2, %v3223_v12, -inf }
0x110f   : > { %3225 = vmax.xlane.f32.xlu1 %v3224_v14 }
0x1110   : > { %v3385_v15 = vpop.f32.mrb[30].mxu0 }
0x1111   : > { %v3389_v16 = vmul.f32 0.35355338, %v3385_v15  ;;  %v4574_v17 = vpop.f32.mrb[31].mxu0 }
0x1113   : > { %v3390_v18 = vsel %vm945_vm2, %v3389_v16, -inf }
0x1114   : > { %3391 = vmax.xlane.f32.xlu0 %v3390_v18  ;;  %v3551_v19 = vpop.f32.mrb[32].mxu0 }
0x1115   : > { %v3555_v20 = vmul.f32 0.35355338, %v3551_v19  ;;  %v4584_v23 = vpop.f32.mrb[33].mxu0 }
0x1117   : > { %v3556_v21 = vsel %vm945_vm2, %v3555_v20, -inf }
0x1118   : > { %3557 = vmax.xlane.f32.xlu0 %v3556_v21  ;;  %v4221_v21 = vld [vmem:[%s5706_s20] ss:$0 sm:$0xff] }
0x1120   : > { %3069 = vrot.lane.b32.xlu1 %v5443_v61, %s5783_s29 }
0x112a   : > { %v3060_v22 = vpop.xlane.xlu0 %3059 }
0x112b   : > { %v3061_v25 = vsub.f32 %v3057_v7, %v3060_v22  ;;  %v3661_v7 = vld [vmem:[%s5705_s19 + $0x18] sm:$0xff] }
0x112c   : > { %v4724_v9 = vpack.c.bf16 %v3661_v7, %v3660_v5 }
0x112d   : > { %v3062_v26 = vmul.f32 1.442695, %v3061_v25 }
0x112e   : > { %4725 = vmatpush3.bf16.msra.mxu0 %v4724_v9 }
0x112f   : > { %4839 = vpow2.f32 %v3062_v26  ;;  %4732 = vmatprep.subr.bf16.mxu0 %v4867_v3 }
0x1139   : > { %v4840_v27 = vpop.eup %4839 }
0x113a   : > { %v3064_v29 = vsel %vm945_vm2, %v4840_v27, 0.0 }
0x1144   : > { %3065 = vadd.xlane.f32.xlu1 %v3064_v29 }
0x119c   : > { %v3226_v30 = vpop.xlane.xlu1 %3225 }
0x119d   : > { %v3227_v31 = vsub.f32 %v3223_v12, %v3226_v30 }
0x119f   : > { %v3228_v32 = vmul.f32 1.442695, %v3227_v31 }
0x11a0   : > { %v3070_v28 = vpop.permute.xlu1 %3069 }
0x11a1   : > { %4841 = vpow2.f32 %v3228_v32  ;;  %4556 = vmatpush3.msra.mxu1 %v3070_v28  ;;  %v3392_v33 = vpop.xlane.xlu0 %3391 }
0x11a2   : > { %v3393_v35 = vsub.f32 %v3389_v16, %v3392_v33  ;;  %4565 = vmatprep.subr.mxu1 %v4869_v6 }
0x11a4   : > { %v3394_v36 = vmul.f32 1.442695, %v3393_v35  ;;  %v3766_v35 = vld [vmem:[%s5707_s21] sm:$0xff] }
0x11a5   : > { %v3558_v37 = vpop.xlane.xlu0 %3557 }
0x11a6   : > { %4843 = vpow2.f32 %v3394_v36  ;;  %v3559_v38 = vsub.f32 %v3555_v20, %v3558_v37  ;;  %v3767_v36 = vld [vmem:[%s5707_s21 + $0x8] sm:$0xff] }
0x11a7   : > { %v4727_v37 = vpack.c.bf16 %v3767_v36, %v3766_v35  ;;  %v3975_v36 = vld [vmem:[%s5712_s26 + $0x60] sm:$0xff] }
0x11a8   : > { %v3560_v39 = vmul.f32 1.442695, %v3559_v38  ;;  %v3769_v38 = vld [vmem:[%s5707_s21 + $0x18] sm:$0xff] }
0x11aa   : > { %4845 = vpow2.f32 %v3560_v39 }
0x11ab   : > { %v4842_v40 = vpop.eup %4841 }
0x11ac   : > { %v3230_v42 = vsel %vm945_vm2, %v4842_v40, 0.0 }
0x11ad   : > { %3231 = vadd.xlane.f32.xlu0 %v3230_v42  ;;  %v3772_v42 = vld [vmem:[%s5709_s23 + $0x8] sm:$0xff] }
0x11b0   : > { %v4844_v43 = vpop.eup %4843 }
0x11b1   : > { %v3396_v44 = vsel %vm945_vm2, %v4844_v43, 0.0 }
0x11b2   : > { %3397 = vadd.xlane.f32.xlu1 %v3396_v44 }
0x11b4   : > { %v4846_v52 = vpop.eup %4845 }
0x11b5   : > { %v3562_v54 = vsel %vm945_vm2, %v4846_v52, 0.0 }
0x11b6   : > { %3563 = vadd.xlane.f32.xlu0 %v3562_v54 }
0x11c3   : > { %3401 = vrot.lane.b32.xlu1 %v5443_v61, %s5784_s7 }
0x11c7   : > { %3567 = vrot.lane.b32.xlu1 %v5443_v61, %s5786_s10  ;;  %s855_s10 = scalar_lea.vmem %s5802_s4, %s5805_s5 }
0x11cc   : > { %3235 = vrot.lane.b32.xlu0 %v5443_v61, %s5782_s11  ;;  %s5801_s11 = sld [smem:[#allocation18_spill]] }
0x11d1   : > { %v3066_v45 = vpop.xlane.xlu1 %3065 }
0x11d2   : > { %4847 = vrcp.f32 %v3066_v45  ;;  %v3775_v45 = vld [vmem:[%s5709_s23 + $0x20] sm:$0xff] }
0x11dc   : > { %v4848_v46 = vpop.eup %4847 }
0x11dd   : > { %v3068_v48 = vmul.f32 %v4848_v46, %v4840_v27  ;;  %v3776_v46 = vld [vmem:[%s5709_s23 + $0x28] sm:$0xff] }
0x11df   : > { %4558 = vmatmul.mubr.msk.f32.vlgmr.msra.gmra.mrb[22].mxu1 %vm945_vm2, %v3068_v48  ;;  %v4739_v48 = vpack.c.bf16 %v3776_v46, %v3775_v45 }
0x11e0   : > { %4567 = vmatprep.mubr.msk.f32.mxu1 %vm4868_vm0, %v4869_v6 }
0x123a   : > { %v3232_v50 = vpop.xlane.xlu0 %3231 }
0x123b   : > { %4849 = vrcp.f32 %v3232_v50 }
0x123f   : > { %v3398_v49 = vpop.xlane.xlu1 %3397 }
0x1240   : > { %4851 = vrcp.f32 %v3398_v49 }
0x1243   : > { %v3564_v55 = vpop.xlane.xlu0 %3563  ;;  %v3402_v58 = vpop.permute.xlu1 %3401 }
0x1244   : > { %4853 = vrcp.f32 %v3564_v55 }
0x1245   : > { %v4850_v56 = vpop.eup %4849 }
0x1246   : > { %v3234_v57 = vmul.f32 %v4850_v56, %v4842_v40  ;;  %v3771_v40 = vld [vmem:[%s5709_s23] sm:$0xff]  ;;  %v3759_v56 = vrot.slane %v5397_v34, %v1923_v41  ;;  %v3778_v41 = vld [vmem:[%s5709_s23 + $0x38] sm:$0xff] }
0x1247   : > { %v3236_v59 = vpop.permute.xlu0 %3235  ;;  %v3568_v61 = vpop.permute.xlu1 %3567  ;;  %v4733_v44 = vpack.c.bf16 %v3772_v42, %v3771_v40 }
0x1248   : > { %4566 = vmatpush3.msra.mxu1 %v3236_v59  ;;  %v3764_v59 = vrot.slane %v5397_v34, %v1928_v47  ;;  %v4223_v47 = vld [vmem:[%s5708_s22] ss:$0 sm:$0xff] }
0x1249   : > { %4568 = vmatmul.mubr.msk.f32.vlgmr.msra.gmra.mrb[24].mxu1 %vm945_vm2, %v3234_v57  ;;  %4575 = vmatprep.subr.mxu1 %v4869_v6 }
0x124a   : > { %v4852_v53 = vpop.eup %4851  ;;  %4576 = vmatpush3.msra.mxu1 %v3402_v58  ;;  %4577 = vmatprep.mubr.msk.f32.mxu1 %vm4868_vm0, %v4869_v6 }
0x124b   : > { %v3400_v60 = vmul.f32 %v4852_v53, %v4844_v43  ;;  %4585 = vmatprep.subr.mxu1 %v4869_v6  ;;  %v3773_v43 = vld [vmem:[%s5709_s23 + $0x10] sm:$0xff] }
0x124d   : > { %4578 = vmatmul.mubr.msk.f32.vlgmr.msra.gmra.mrb[26].mxu1 %vm945_vm2, %v3400_v60 }
0x124e   : > { %v4854_v62 = vpop.eup %4853  ;;  %4586 = vmatpush3.msra.mxu1 %v3568_v61  ;;  %4587 = vmatprep.mubr.msk.f32.mxu1 %vm4868_vm0, %v4869_v6  ;;  %v3777_v61 = vld [vmem:[%s5709_s23 + $0x30] sm:$0xff] }
0x124f   : > { %v3566_v0 = vmul.f32 %v4854_v62, %v4846_v52  ;;  %4726 = vmatprep.subr.bf16.mxu1 %v4867_v3  ;;  %v3774_v52 = vld [vmem:[%s5709_s23 + $0x18] sm:$0xff]  ;;  %v4742_v62 = vpack.c.bf16 %v3778_v41, %v3777_v61 }
0x1250   : > { %v4736_v54 = vpack.c.bf16 %v3774_v52, %v3773_v43  ;;  %v3955_v52 = vsub.s32 4, %v5187_v51 }
0x1251   : > { %4588 = vmatmul.mubr.msk.f32.vlgmr.msra.gmra.mrb[28].mxu1 %vm945_vm2, %v3566_v0 }
0x1252   : > { %4609 = vmatprep.mubr.msk.f32.mxu1 %vm4868_vm0, %v4869_v6  ;;  %4728 = vmatpush3.bf16.msra.mxu1 %v4727_v37  ;;  %v3976_v37 = vld [vmem:[%s5712_s26 + $0x68] sm:$0xff] }
0x1253   : > { %4729 = vmatprep.subr.bf16.mxu1 %v4867_v3 }
0x12b2   : > { %v3141_v1 = vpop.f32.mrb[22].mxu1 }
0x12b3   : > { %v4559_v2 = vpop.f32.mrb[23].mxu1 }
0x131c   : > { %v3307_v10 = vpop.f32.mrb[24].mxu1 }
0x131d   : > { %3644 = vrot.lane.b32.xlu0 %v3307_v10, %s5794_s3  ;;  %v4569_v11 = vpop.f32.mrb[25].mxu1  ;;  %v3963_v10 = vld [vmem:[%s5712_s26] sm:$0xff] }
0x131e   : > { %v3964_v11 = vld [vmem:[%s5712_s26 + $0x8] sm:$0xff] }
0x1320   : > { %v3473_v12 = vpop.f32.mrb[26].mxu1 }
0x1321   : > { %3648 = vrot.lane.b32.xlu1 %v3473_v12, %s5795_s0  ;;  %v4579_v13 = vpop.f32.mrb[27].mxu1 }
0x1322   : > { %v4745_v13 = vpack.c.bf16 %v3964_v11, %v3963_v10 }
0x1324   : > { %v3639_v14 = vpop.f32.mrb[28].mxu1 }
0x1325   : > { %3652 = vrot.lane.b32.xlu0 %v3639_v14, %s5796_s2  ;;  %v4589_v15 = vpop.f32.mrb[29].mxu1  ;;  %v3965_v14 = vld [vmem:[%s5712_s26 + $0x10] sm:$0xff] }
0x1326   : > { %v3966_v15 = vld [vmem:[%s5712_s26 + $0x18] sm:$0xff] }
0x138f   : > { %v3645_v16 = vpop.permute.xlu0 %3644 }
0x1390   : > { %v3655_v18 = vsel %vm945_vm2, %v3141_v1, %v3645_v16  ;;  %v4749_v16 = vpack.c.bf16 %v3966_v15, %v3965_v14 }
0x1393   : > { %v3649_v17 = vpop.permute.xlu1 %3648 }
0x1394   : > { %v3656_v19 = vsel %vm1619_vm3, %v3655_v18, %v3649_v17  ;;  %v3967_v17 = vld [vmem:[%s5712_s26 + $0x20] sm:$0xff]  ;;  %v3968_v18 = vld [vmem:[%s5712_s26 + $0x28] sm:$0xff] }
0x1397   : > { %v3653_v20 = vpop.permute.xlu0 %3652 }
0x1398   : > { %v3657_v23 = vsel %vm1621_vm4, %v3656_v19, %v3653_v20  ;;  %v4753_v19 = vpack.c.bf16 %v3968_v18, %v3967_v17  ;;  %v3969_v20 = vld [vmem:[%s5712_s26 + $0x30] sm:$0xff] }
0x1399   : > { %4599 = vmatmul.mubr.msk.f32.vlgmr.msra.gmra.mrb[34].mxu0 %vm868_vm1, %v3657_v23  ;;  %v3970_v23 = vld [vmem:[%s5712_s26 + $0x38] sm:$0xff] }
0x139a   : > { %4628 = vmatprep.mubr.msk.f32.mxu0 %vm4868_vm0, %v4869_v6  ;;  %4734 = vmatpush3.bf16.msra.mxu0 %v4733_v44 }
0x139b   : > { %4735 = vmatprep.subr.bf16.mxu0 %v4867_v3 }
0x139e   : > { %4737 = vmatpush3.bf16.msra.mxu0 %v4736_v54  ;;  %v3956_v54 = vrot.slane %v5397_v34, %v3955_v52 }
0x139f   : > { %4738 = vmatprep.subr.bf16.mxu0 %v4867_v3 }
0x13a2   : > { %4740 = vmatpush3.bf16.msra.mxu0 %v4739_v48 }
0x13a3   : > { %4741 = vmatprep.subr.bf16.mxu0 %v4867_v3 }
0x13a6   : > { %4743 = vmatpush3.bf16.msra.mxu0 %v4742_v62 }
0x146c   : > { %v3738_v22 = vpop.f32.mrb[34].mxu0 }
0x146d   : > { %v3739_v25 = vadd.f32 %v4221_v21, %v3738_v22  ;;  %v4600_v26 = vpop.f32.mrb[35].mxu0  ;;  %v4757_v21 = vpack.c.bf16 %v3970_v23, %v3969_v20  ;;  %v3971_v22 = vld [vmem:[%s5712_s26 + $0x40] sm:$0xff] }
0x146f   : > { %v3742_v27 = vadd.f32 %v3739_v25, %v5412_v8  ;;  %v3768_v8 = vld [vmem:[%s5707_s21 + $0x10] sm:$0xff]  ;;  %v3972_v25 = vld [vmem:[%s5712_s26 + $0x48] sm:$0xff] }
0x1470   : > { %v4730_v39 = vpack.c.bf16 %v3769_v38, %v3768_v8  ;;  %v4761_v26 = vpack.c.bf16 %v3972_v25, %v3971_v22  ;;  %v4769_v8 = vpack.c.bf16 %v3976_v37, %v3975_v36  ;;  %v3977_v38 = vld [vmem:[%s5712_s26 + $0x70] sm:$0xff] }
0x1471   : > { %v3743_v29 = vsel %vm868_vm1, %v3742_v27, 0.0 }
0x1472   : > { %3744 = vadd.xlane.f32.xlu1 %v3743_v29  ;;  %4731 = vmatpush3.bf16.msra.mxu1 %v4730_v39  ;;  %v3978_v39 = vld [vmem:[%s5712_s26 + $0x78] sm:$0xff] }
0x1473   : > { %4744 = vmatprep.subr.bf16.mxu1 %v4867_v3  ;;  %v4773_v40 = vpack.c.bf16 %v3978_v39, %v3977_v38 }
0x14ff   : > { %v3745_v30 = vpop.xlane.xlu1 %3744 }
0x1500   : > { %v3746_v31 = vmul.f32 0.03125, %v3745_v30 }
0x1502   : > { %v3747_v32 = vsub.f32 %v3742_v27, %v3746_v31 }
0x1504   : > { %v3748_v28 = vmul.f32 %v3747_v32, %v3747_v32 }
0x1506   : > { %v3749_v33 = vsel %vm868_vm1, %v3748_v28, 0.0  ;;  %v3973_v28 = vld [vmem:[%s5712_s26 + $0x50] sm:$0xff] }
0x1507   : > { %3750 = vadd.xlane.f32.xlu0 %v3749_v33  ;;  %v3974_v33 = vld [vmem:[%s5712_s26 + $0x58] sm:$0xff] }
0x1508   : > { %v4765_v35 = vpack.c.bf16 %v3974_v33, %v3973_v28 }
0x1594   : > { %v3751_v50 = vpop.xlane.xlu0 %3750 }
0x1595   : > { %v3752_v49 = vmul.f32 0.03125, %v3751_v50 }
0x1597   : > { %v3753_v55 = vadd.f32 1e-05, %v3752_v49 }
0x1599   : > { %4855 = vrsqrt.f32 %v3753_v55 }
0x15a3   : > { %v4856_v57 = vpop.eup %4855 }
0x15a4   : > { %v3755_v58 = vmul.f32 %v4856_v57, %v3747_v32 }
0x15a6   : > { %v3760_v53 = vmul.f32 %v3759_v56, %v3755_v58  ;;  %v3979_v56 = vld [vmem:[%s5801_s11] sm:$0x1] }
0x15a8   : > { %v3765_v60 = vadd.f32 %v3764_v59, %v3760_v53 }
0x15aa   : > { %4610 = vmatmul.mubr.msk.f32.vlgmr.msra.gmra.mrb[30].mxu1 %vm868_vm1, %v3765_v60 }
0x15ab   : > { %4663 = vmatprep.mubr.msk.f32.mxu1 %vm4868_vm0, %v4869_v6  ;;  %v4225_v6 = vld [vmem:[%s5710_s24] ss:$0 sm:$0xff]  ;;  %4747 = vmatpush3.bf16.xpose.msk.msra.mxu1 %vm5601_vm7, %v4745_v13 }
0x15ac   : > { %4748 = vmatprep.subr.bf16.mxu1 %v4867_v3 }
0x15b3   : > { %4751 = vmatpush3.bf16.xpose.msk.msra.mxu1 %vm5601_vm7, %v4749_v16 }
0x15b4   : > { %4752 = vmatprep.subr.bf16.mxu1 %v4867_v3 }
0x15bb   : > { %4755 = vmatpush3.bf16.xpose.msk.msra.mxu1 %vm5601_vm7, %v4753_v19 }
0x15bc   : > { %4756 = vmatprep.subr.bf16.mxu1 %v4867_v3 }
0x15c3   : > { %4759 = vmatpush3.bf16.xpose.msk.msra.mxu1 %vm5601_vm7, %v4757_v21 }
0x15c4   : > { %4760 = vmatprep.subr.bf16.mxu1 %v4867_v3 }
0x15cb   : > { %4763 = vmatpush3.bf16.xpose.msk.msra.mxu1 %vm5601_vm7, %v4761_v26 }
0x15cc   : > { %4764 = vmatprep.subr.bf16.mxu1 %v4867_v3 }
0x15d3   : > { %4767 = vmatpush3.bf16.xpose.msk.msra.mxu1 %vm5601_vm7, %v4765_v35 }
0x15d4   : > { %4768 = vmatprep.subr.bf16.mxu1 %v4867_v3 }
0x15db   : > { %4771 = vmatpush3.bf16.xpose.msk.msra.mxu1 %vm5601_vm7, %v4769_v8 }
0x15dc   : > { %4772 = vmatprep.subr.bf16.mxu1 %v4867_v3  ;;  %v3960_v3 = vsub.s32 5, %v5187_v51 }
0x15de   : > { %v3961_v48 = vrot.slane %v5397_v34, %v3960_v3 }
0x15e3   : > { %4775 = vmatpush3.bf16.xpose.msk.msra.mxu1 %vm5601_vm7, %v4773_v40 }
0x167d   : > { %v3855_v0 = vpop.f32.mrb[30].mxu1 }
0x167e   : > { %v3856_v1 = vadd.f32 %v4223_v47, %v3855_v0  ;;  %v4611_v2 = vpop.f32.mrb[31].mxu1 }
0x1680   : > { %v3859_v4 = vmax.f32 %v3856_v1, 0.0 }
0x1682   : > { %4629 = vmatmul.mubr.msk.f32.vlgmr.msra.gmra.mrb[36].mxu0 %vm1833_vm5, %v3859_v4 }
0x1755   : > { %v3935_v63 = vpop.f32.mrb[36].mxu0 }
0x1756   : > { %v3936_v24 = vadd.f32 %v4225_v6, %v3935_v63  ;;  %v4630_v5 = vpop.f32.mrb[37].mxu0 }
0x1758   : > { %v3939_v7 = vadd.f32 %v3936_v24, %v3765_v60 }
0x175a   : > { %v3940_v9 = vsel %vm868_vm1, %v3939_v7, 0.0 }
0x175b   : > { %3941 = vadd.xlane.f32.xlu0 %v3940_v9 }
0x17e8   : > { %v3942_v27 = vpop.xlane.xlu0 %3941 }
0x17e9   : > { %v3943_v29 = vmul.f32 0.03125, %v3942_v27 }
0x17eb   : > { %v3944_v30 = vsub.f32 %v3939_v7, %v3943_v29 }
0x17ed   : > { %v3945_v31 = vmul.f32 %v3944_v30, %v3944_v30 }
0x17ef   : > { %v3946_v32 = vsel %vm868_vm1, %v3945_v31, 0.0 }
0x17f0   : > { %3947 = vadd.xlane.f32.xlu1 %v3946_v32 }
0x187d   : > { %v3948_v42 = vpop.xlane.xlu1 %3947 }
0x187e   : > { %v3949_v43 = vmul.f32 0.03125, %v3948_v42 }
0x1880   : > { %v3950_v44 = vadd.f32 1e-05, %v3949_v43 }
0x1882   : > { %4857 = vrsqrt.f32 %v3950_v44 }
0x188c   : > { %v4858_v45 = vpop.eup %4857 }
0x188d   : > { %v3952_v46 = vmul.f32 %v4858_v45, %v3944_v30 }
0x188f   : > { %v3957_v50 = vmul.f32 %v3956_v54, %v3952_v46 }
0x1891   : > { %v3962_v49 = vadd.f32 %v3961_v48, %v3957_v50 }
0x1893   : > { %v3981_v55 = vrot.slane %v3962_v49, 7 }
0x1895   : > { %4664 = vmatmul.mubr.msk.f32.vlgmr.msra.gmra.mrb[32].mxu1 %vm868_vm1, %v3981_v55 }
0x1968   : > { %v4098_v51 = vpop.f32.mrb[32].mxu1 }
0x1969   : > { %v4099_v57 = vadd.f32 %v4098_v51, %v3979_v56  ;;  %v4665_v58 = vpop.f32.mrb[33].mxu1 }
0x196b   : > { %4102 = vst [vmem:[%s855_s10] sm:$0x1] %v4099_v57 }
0x196c PF: > { %s5803_s12 = sld [smem:[#allocation2_spill]] }
0x1972   : > { %s38_s8 = sadd.s32 1, %s5803_s12  }
0x1973   : > { %p35_p4 = scmp.ge.s32.totalorder %s38_s8, 4  }
0x1975   :  { %37 = sbr.rel (!%p35_p4) target bundleno = 18 (0x12), region = 165 }

</bundles_post_ra>
